<compile_context>
chip_gen: v5e
topology: v5e:2x2
jax: 0.10.0
libtpu: 0.0.40
codegen_flags: <defaults>
</compile_context>

<pallas_src>
import functools

import jax
import jax.numpy as jnp
from jax.experimental import pallas as pl
from jax.experimental.pallas import tpu as pltpu

# ----------------------------- model constants ------------------------------
TABLE_SIZE = 3
N_MOVES = 4                       # len(table_moves)
N_EVENTS = 1 + N_MOVES
CARDS_EMB_W = 12
EVENT_EMB_W = 12
PL_ID_EMB_W = 12
PL_POS_EMB_W = 12
FLOAT_FEAT_SIZE = 8
N_LAY = 12
KSIZE = 3                         # EncCNN kernel_size
CN_ENC_WIDTH = 7 * CARDS_EMB_W    # 84
N_FLOATS = 1 + 8                  # won_prob + cash
C_IN = CN_ENC_WIDTH + EVENT_EMB_W + PL_ID_EMB_W + PL_POS_EMB_W + N_FLOATS          # 129
C_IN_MAIN = C_IN - 1                                                               # 128 (MXU aligned)
C_OUT = CN_ENC_WIDTH + EVENT_EMB_W + PL_ID_EMB_W + PL_POS_EMB_W + N_FLOATS * FLOAT_FEAT_SIZE  # 192
LN_EPS = 1e-5


# ------------------------------- Pallas kernel ------------------------------
def _enc_cnn_kernel(x_ref, won_ref, state_ref, pwm_ref, pww_ref,
                    cw_ref, cb_ref, lg_ref, lb_ref,
                    out_ref, zeroes_ref, fstate_ref,
                    acc_ref, cin_ref, *, ksize):
    bb, s, _ = x_ref.shape            # batch-block rows, sequence length
    c = out_ref.shape[-1]             # n_filters
    m = bb * s                        # fat MXU M dimension
    l = pl.program_id(1)              # layer index (grid axis 1, "arbitrary")

    # layer 0: projection dense = aligned K=128 bf16 MXU matmul (f32 acc) plus
    # the rank-1 won_prob term (== the 129th row of the reference proj weight).
    @pl.when(l == 0)
    def _():
        x = x_ref[...].reshape(m, -1)                                      # (M, 128) bf16
        h0 = jnp.dot(x, pwm_ref[...], preferred_element_type=jnp.float32)  # (M, C) f32
        h0 = h0 + won_ref[...].reshape(m, 1) * pww_ref[...]
        acc_ref[...] = h0

    h = acc_ref[...]                                                       # (M, C) f32 carry
    h3 = h.reshape(bb, s, c)

    # per-layer fin_state = last (k-1) timesteps of this layer's conv input
    # (S >= k-1 asserted in the wrapper, so these rows come from h, exact f32)
    fstate_ref[:, 0, :, :] = h3[:, s - (ksize - 1):, :]

    # conv input scratch (bf16): [history (k-1 rows) ; current sequence]
    cin_ref[:, :ksize - 1, :] = state_ref[:, 0, :, :]
    cin_ref[:, ksize - 1:, :] = h3.astype(jnp.bfloat16)

    # causal conv: ksize accumulated (M, C) @ (C, C) bf16 matmuls, f32 acc
    acc = jnp.zeros((m, c), jnp.float32)
    for k in range(ksize):
        tap = cin_ref[:, pl.ds(k, s), :].reshape(m, c)                     # (M, C) bf16
        acc = acc + jnp.dot(tap, cw_ref[l * ksize + k],
                            preferred_element_type=jnp.float32)
    acc = acc + cb_ref[l]                                                  # (1, C) broadcast

    # LayerNorm over feature dim, two-pass, f32
    mu = jnp.mean(acc, axis=-1, keepdims=True)
    xm = acc - mu
    var = jnp.mean(xm * xm, axis=-1, keepdims=True)
    normed = xm * jax.lax.rsqrt(var + LN_EPS) * lg_ref[l] + lb_ref[l]

    # activation + residual; per-layer int8 zeroes slab (lane-dense writeback)
    act = jnp.maximum(normed, 0.0)
    zeroes_ref[:, 0, :, :] = (normed <= 0.0).astype(jnp.int8).reshape(bb, s, c)

    h_new = h + act
    acc_ref[...] = h_new

    @pl.when(l == pl.num_programs(1) - 1)
    def _():
        out_ref[...] = h_new.reshape(bb, s, c).astype(out_ref.dtype)


def _tpu_kind():
    try:
        return jax.devices()[0].device_kind.lower()
    except Exception:
        return ""


def enc_cnn_pallas(x_main, won, state, pw_main, pw_won,
                   conv_w, conv_b, ln_g, ln_b, *, b_blk=None):
    """x_main: (B,S,128) bf16, won: (B,S,1) f32, state: (B,n_lay,k-1,C) bf16,
    pw_main: (128,C) bf16, pw_won: (1,C) f32, conv_w: (n_lay*k,C,C) bf16,
    conv_b/ln_g/ln_b: (n_lay,1,C) f32.  Best perf when S is a multiple of 8."""
    B, S, c_in_main = x_main.shape
    c = pw_main.shape[1]
    n_lay = conv_b.shape[0]
    ksize = conv_w.shape[0] // n_lay
    assert S >= ksize - 1, "sequence must be at least kernel_size-1 steps long"

    kind = _tpu_kind()
    num_tc = 2 if "v7" in kind else 1
    if "v5" in kind or "v6" in kind:
        vmem_limit = 100 * 1024 * 1024          # 128 MiB physical VMEM
    elif "v7" in kind:
        vmem_limit = 48 * 1024 * 1024           # 64 MiB physical VMEM
    else:
        vmem_limit = None                       # leave compiler default

    if b_blk is None:
        # Fat MXU M dimension: target M = b_blk*S >= ~512 (256-wide MXU on
        # v6e/v7x), but keep >= num_tc batch blocks so all TensorCores work.
        b_blk = max(1, min(B, 512 // max(S, 1)))
        if num_tc > 1:
            b_blk = max(1, min(b_blk, pl.cdiv(B, num_tc)))

    b_pad = pl.cdiv(B, b_blk) * b_blk
    if b_pad != B:
        pad = b_pad - B
        x_main = jnp.pad(x_main, ((0, pad), (0, 0), (0, 0)))
        won = jnp.pad(won, ((0, pad), (0, 0), (0, 0)))
        state = jnp.pad(state, ((0, pad), (0, 0), (0, 0), (0, 0)))

    kernel = functools.partial(_enc_cnn_kernel, ksize=ksize)

    out, zeroes, fstate = pl.pallas_call(
        kernel,
        grid=(b_pad // b_blk, n_lay),
        in_specs=[
            pl.BlockSpec((b_blk, S, c_in_main), lambda b, l: (b, 0, 0)),
            pl.BlockSpec((b_blk, S, 1), lambda b, l: (b, 0, 0)),
            pl.BlockSpec((b_blk, 1, ksize - 1, c), lambda b, l: (b, l, 0, 0)),
            # weights: constant index maps -> fetched once, stay VMEM resident
            pl.BlockSpec((c_in_main, c), lambda b, l: (0, 0)),
            pl.BlockSpec((1, c), lambda b, l: (0, 0)),
            pl.BlockSpec((n_lay * ksize, c, c), lambda b, l: (0, 0, 0)),
            pl.BlockSpec((n_lay, 1, c), lambda b, l: (0, 0, 0)),
            pl.BlockSpec((n_lay, 1, c), lambda b, l: (0, 0, 0)),
            pl.BlockSpec((n_lay, 1, c), lambda b, l: (0, 0, 0)),
        ],
        out_specs=[
            # constant along the layer axis -> written back once per batch block
            pl.BlockSpec((b_blk, S, c), lambda b, l: (b, 0, 0)),
            # per-layer slabs -> writeback overlapped with next layer's compute
            pl.BlockSpec((b_blk, 1, S, c), lambda b, l: (b, l, 0, 0)),
            pl.BlockSpec((b_blk, 1, ksize - 1, c), lambda b, l: (b, l, 0, 0)),
        ],
        out_shape=(
            jax.ShapeDtypeStruct((b_pad, S, c), jnp.bfloat16),
            jax.ShapeDtypeStruct((b_pad, n_lay, S, c), jnp.int8),
            jax.ShapeDtypeStruct((b_pad, n_lay, ksize - 1, c), jnp.float32),
        ),
        scratch_shapes=[
            pltpu.VMEM((b_blk * S, c), jnp.float32),           # residual carry
            pltpu.VMEM((b_blk, S + ksize - 1, c), jnp.bfloat16),  # conv input
        ],
        compiler_params=pltpu.CompilerParams(
            dimension_semantics=("parallel", "arbitrary"),
            vmem_limit_bytes=vmem_limit),
    )(x_main, won, state, pw_main, pw_won, conv_w, conv_b, ln_g, ln_b)

    if b_pad != B:
        out, zeroes, fstate = out[:B], zeroes[:B], fstate[:B]
    return out, zeroes, fstate


# ------------------------------- parameters ---------------------------------
def init_params(key):
    ks = jax.random.split(key, 16)

    def dense(k, shape, fan_in):
        return (jax.random.normal(k, shape, jnp.float32)
                / jnp.sqrt(jnp.float32(fan_in)))

    return {
        # simplified CardNet (see TODO(synk) above)
        'card_emb':       dense(ks[0], (53, CARDS_EMB_W), CARDS_EMB_W),
        'card_enc_w':     dense(ks[1], (7 * CARDS_EMB_W, CN_ENC_WIDTH), 7 * CARDS_EMB_W),
        'card_enc_b':     jnp.zeros((CN_ENC_WIDTH,), jnp.float32),
        'won_w':          dense(ks[2], (CN_ENC_WIDTH, 1), CN_ENC_WIDTH),
        'won_b':          jnp.zeros((1,), jnp.float32),
        # ProCNN_DMK_PG embeddings
        'event_id_emb':   dense(ks[3], (N_EVENTS, EVENT_EMB_W), EVENT_EMB_W),
        'player_id_emb':  dense(ks[4], (TABLE_SIZE, PL_ID_EMB_W), PL_ID_EMB_W),
        'player_pos_emb': dense(ks[5], (TABLE_SIZE, PL_POS_EMB_W), PL_POS_EMB_W),
        # EncCNN (proj_w rows follow the reference concat order:
        # [card_enc(84), won_prob(1), event(12), cash(8), pl_id(12), pl_pos(12)])
        'proj_w':         dense(ks[6], (C_IN, C_OUT), C_IN),
        'conv_w':         dense(ks[7], (N_LAY, KSIZE, C_OUT, C_OUT), KSIZE * C_OUT),
        'conv_b':         jnp.zeros((N_LAY, 1, C_OUT), jnp.float32),
        'ln_g':           jnp.ones((N_LAY, 1, C_OUT), jnp.float32),
        'ln_b':           jnp.zeros((N_LAY, 1, C_OUT), jnp.float32),
        # logits head (LayDense, no bias)
        'logits_w':       dense(ks[8], (C_OUT, N_MOVES), C_OUT),
    }


# ------------------------------- forward glue --------------------------------
def procnn_dmk_pg_forward(params, cards, event_id, cash, pl_id, pl_pos,
                          pl_stats=None, enc_cnn_state=None):
    del pl_stats  # n_st = 0 -> unused, as in the reference module
    B, S = event_id.shape

    # ---- card_net.card_enc + won_prob (no_grad path; simplified, see TODO) ----
    ce = params['card_emb'][cards].reshape(B, S, 7 * CARDS_EMB_W)          # (B,S,84)
    card_enc = jax.nn.relu(ce @ params['card_enc_w'] + params['card_enc_b'])
    zeroes_enc = (card_enc <= 0.0).astype(jnp.float32)
    won_prob = jax.nn.sigmoid(card_enc @ params['won_w'] + params['won_b'])  # (B,S,1)

    # ---- feature split: 128-lane main slab + won_prob as a rank-1 proj term ----
    # (equivalent to torch.cat([card_enc, won_prob, event, cash, id, pos]) @ proj_w)
    x_main = jnp.concatenate(
        [card_enc,
         params['event_id_emb'][event_id],
         cash,
         params['player_id_emb'][pl_id],
         params['player_pos_emb'][pl_pos]], axis=-1).astype(jnp.float32)   # (B,S,128)
    proj_w = params['proj_w']                                              # (129, C_OUT)
    pw_main = jnp.concatenate([proj_w[:CN_ENC_WIDTH],
                               proj_w[CN_ENC_WIDTH + 1:]], axis=0)         # (128, C_OUT)
    pw_won = proj_w[CN_ENC_WIDTH:CN_ENC_WIDTH + 1]                         # (1, C_OUT)

    if enc_cnn_state is None:
        enc_cnn_state = jnp.zeros((B, N_LAY, KSIZE - 1, C_OUT), jnp.float32)

    out, zeroes4, fin_state = enc_cnn_pallas(
        x_main.astype(jnp.bfloat16),
        won_prob.astype(jnp.float32),
        enc_cnn_state.astype(jnp.bfloat16),
        pw_main.astype(jnp.bfloat16),
        pw_won.astype(jnp.float32),
        params['conv_w'].reshape(N_LAY * KSIZE, C_OUT, C_OUT).astype(jnp.bfloat16),
        params['conv_b'], params['ln_g'], params['ln_b'])

    # ---- tiny heads outside the kernel (keeps kernel output path lane-dense) ----
    logits = out.astype(jnp.float32) @ params['logits_w']                  # (B,S,4)
    probs = jax.nn.softmax(logits, axis=-1)
    logp = jax.nn.log_softmax(logits, axis=-1)
    entropy = jnp.mean(-jnp.sum(probs * logp, axis=-1))

    # int8 (B, n_lay, S, C) -> f32 (B, S, n_lay*C) 0/1 indicators
    zeroes_cnn = jnp.transpose(zeroes4, (0, 2, 1, 3)).reshape(
        B, S, N_LAY * C_OUT).astype(jnp.float32)

    return {
        'enc_cnn_output': out,
        'logits': logits,
        'probs': probs,
        'entropy': entropy,
        'fin_state': fin_state,
        'zeroes_enc': zeroes_enc,
        'zeroes_cnn': zeroes_cnn,
    }


# ----------------------------------- main ------------------------------------
if __name__ == "__main__":
    key = jax.random.PRNGKey(0)
    pkey, *ikeys = jax.random.split(key, 7)

    B, S = 2, 8
    params = init_params(pkey)

    cards = jax.random.randint(ikeys[0], (B, S, 7), 0, 53, dtype=jnp.int32)
    event_id = jax.random.randint(ikeys[1], (B, S), 0, N_EVENTS, dtype=jnp.int32)
    cash = jax.random.uniform(ikeys[2], (B, S, 8), dtype=jnp.float32)
    player_id = jax.random.randint(ikeys[3], (B, S), 0, TABLE_SIZE, dtype=jnp.int32)
    player_pos = jax.random.randint(ikeys[4], (B, S), 0, TABLE_SIZE, dtype=jnp.int32)
    player_stats = jnp.zeros((B, S, 0), jnp.float32)

    out = procnn_dmk_pg_forward(params, cards, event_id, cash,
                                player_id, player_pos, player_stats)
    jax.block_until_ready(out)

    assert out['logits'].shape == (B, S, N_MOVES)
    assert out['probs'].shape == (B, S, N_MOVES)
    assert out['enc_cnn_output'].shape == (B, S, C_OUT)
    assert out['fin_state'].shape == (B, N_LAY, KSIZE - 1, C_OUT)
    assert out['zeroes_cnn'].shape == (B, S, N_LAY * C_OUT)
    assert bool(jnp.all(jnp.isfinite(out['logits'])))

    print("KERNEL_OK")
</pallas_src>

<mosaic_0001>
module attributes {stable_mosaic.version = 11 : i64} {
  func.func @_enc_cnn_kernel(%arg0: i32, %arg1: i32, %arg2: memref<2x8x128xbf16, #tpu.memory_space<vmem>>, %arg3: memref<2x8x1xf32, #tpu.memory_space<vmem>>, %arg4: memref<2x1x2x192xbf16, #tpu.memory_space<vmem>>, %arg5: memref<128x192xbf16, #tpu.memory_space<vmem>>, %arg6: memref<1x192xf32, #tpu.memory_space<vmem>>, %arg7: memref<36x192x192xbf16, #tpu.memory_space<vmem>>, %arg8: memref<12x1x192xf32, #tpu.memory_space<vmem>>, %arg9: memref<12x1x192xf32, #tpu.memory_space<vmem>>, %arg10: memref<12x1x192xf32, #tpu.memory_space<vmem>>, %arg11: memref<2x8x192xbf16, #tpu.memory_space<vmem>>, %arg12: memref<2x1x8x192xi8, #tpu.memory_space<vmem>>, %arg13: memref<2x1x2x192xf32, #tpu.memory_space<vmem>>, %arg14: memref<16x192xf32, #tpu.memory_space<vmem>>, %arg15: memref<2x10x192xbf16, #tpu.memory_space<vmem>>) attributes {dimension_semantics = [#tpu.dimension_semantics<parallel>, #tpu.dimension_semantics<arbitrary>], iteration_bounds = array<i64: 1, 12>, scalar_prefetch = 0 : i64, scratch_operands = 2 : i64, tpu.core_type = #tpu.core_type<tc>, window_params = [{transform_indices = @transform_0, window_bounds = array<i64: 2, 8, 128>}, {transform_indices = @transform_1, window_bounds = array<i64: 2, 8, 1>}, {transform_indices = @transform_2, window_bounds = array<i64: 2, 1, 2, 192>}, {pipeline_mode = #tpu.pipeline_mode<synchronous>, transform_indices = @transform_3, window_bounds = array<i64: 128, 192>}, {pipeline_mode = #tpu.pipeline_mode<synchronous>, transform_indices = @transform_4, window_bounds = array<i64: 1, 192>}, {pipeline_mode = #tpu.pipeline_mode<synchronous>, transform_indices = @transform_5, window_bounds = array<i64: 36, 192, 192>}, {pipeline_mode = #tpu.pipeline_mode<synchronous>, transform_indices = @transform_6, window_bounds = array<i64: 12, 1, 192>}, {pipeline_mode = #tpu.pipeline_mode<synchronous>, transform_indices = @transform_7, window_bounds = array<i64: 12, 1, 192>}, {pipeline_mode = #tpu.pipeline_mode<synchronous>, transform_indices = @transform_8, window_bounds = array<i64: 12, 1, 192>}, {transform_indices = @transform_9, window_bounds = array<i64: 2, 8, 192>}, {transform_indices = @transform_10, window_bounds = array<i64: 2, 1, 8, 192>}, {transform_indices = @transform_11, window_bounds = array<i64: 2, 1, 2, 192>}]} {
    %c0_i32 = arith.constant 0 : i32
    %0 = arith.cmpi eq, %arg1, %c0_i32 : i32
    %1 = arith.extui %0 : i1 to i32
    %c0_i32_0 = arith.constant 0 : i32
    %2 = arith.cmpi ne, %1, %c0_i32_0 : i32
    scf.if %2 {
      %c0_55 = arith.constant 0 : index
      %c0_56 = arith.constant 0 : index
      %c0_57 = arith.constant 0 : index
      %87 = vector.load %arg2[%c0_55, %c0_56, %c0_57] : memref<2x8x128xbf16, #tpu.memory_space<vmem>>, vector<2x8x128xbf16>
      %88 = vector.shape_cast %87 : vector<2x8x128xbf16> to vector<16x128xbf16>
      %c0_58 = arith.constant 0 : index
      %c0_59 = arith.constant 0 : index
      %89 = vector.load %arg5[%c0_58, %c0_59] : memref<128x192xbf16, #tpu.memory_space<vmem>>, vector<128x192xbf16>
      %cst_60 = arith.constant dense<0.000000e+00> : vector<16x192xf32>
      %90 = tpu.matmul %88, %89, %cst_60 {dimension_numbers = #tpu.dot_dimension_numbers<[1], [0], [0], [1], [0, 0, 1, 1], [], []>} : vector<16x128xbf16>, vector<128x192xbf16>, vector<16x192xf32> -> vector<16x192xf32>
      %c0_61 = arith.constant 0 : index
      %c0_62 = arith.constant 0 : index
      %c0_63 = arith.constant 0 : index
      %91 = vector.load %arg3[%c0_61, %c0_62, %c0_63] : memref<2x8x1xf32, #tpu.memory_space<vmem>>, vector<2x8x1xf32>
      %92 = vector.shape_cast %91 : vector<2x8x1xf32> to vector<16x1xf32>
      %c0_64 = arith.constant 0 : index
      %c0_65 = arith.constant 0 : index
      %93 = vector.load %arg6[%c0_64, %c0_65] : memref<1x192xf32, #tpu.memory_space<vmem>>, vector<1x192xf32>
      %94 = vector.broadcast %92 : vector<16x1xf32> to vector<16x192xf32>
      %95 = vector.broadcast %93 : vector<1x192xf32> to vector<16x192xf32>
      %96 = arith.mulf %94, %95 : vector<16x192xf32>
      %97 = arith.addf %90, %96 : vector<16x192xf32>
      %c0_66 = arith.constant 0 : index
      %c0_67 = arith.constant 0 : index
      %98 = vector.load %arg14[%c0_66, %c0_67] : memref<16x192xf32, #tpu.memory_space<vmem>>, vector<16x192xf32>
      tpu.vector_store %arg14[%c0_66, %c0_67], %97 {strides = array<i32>} : memref<16x192xf32, #tpu.memory_space<vmem>>, vector<16x192xf32>,
    } else {
    }
    %c0 = arith.constant 0 : index
    %c0_1 = arith.constant 0 : index
    %3 = vector.load %arg14[%c0, %c0_1] : memref<16x192xf32, #tpu.memory_space<vmem>>, vector<16x192xf32>
    %4 = vector.shape_cast %3 : vector<16x192xf32> to vector<2x8x192xf32>
    %5 = vector.extract_strided_slice %4 {offsets = [0, 6, 0], sizes = [2, 2, 192], strides = [1, 1, 1]} : vector<2x8x192xf32> to vector<2x2x192xf32>
    %c0_2 = arith.constant 0 : index
    %c0_3 = arith.constant 0 : index
    %c0_4 = arith.constant 0 : index
    %c0_5 = arith.constant 0 : index
    %6 = vector.load %arg13[%c0_2, %c0_3, %c0_4, %c0_5] : memref<2x1x2x192xf32, #tpu.memory_space<vmem>>, vector<2x1x2x192xf32>
    %7 = vector.shape_cast %6 : vector<2x1x2x192xf32> to vector<2x2x192xf32>
    %8 = vector.shape_cast %5 : vector<2x2x192xf32> to vector<2x1x2x192xf32>
    tpu.vector_store %arg13[%c0_2, %c0_3, %c0_4, %c0_5], %8 {strides = array<i32>} : memref<2x1x2x192xf32, #tpu.memory_space<vmem>>, vector<2x1x2x192xf32>,
    %c0_6 = arith.constant 0 : index
    %c0_7 = arith.constant 0 : index
    %c0_8 = arith.constant 0 : index
    %c0_9 = arith.constant 0 : index
    %9 = vector.load %arg4[%c0_6, %c0_7, %c0_8, %c0_9] : memref<2x1x2x192xbf16, #tpu.memory_space<vmem>>, vector<2x1x2x192xbf16>
    %10 = vector.shape_cast %9 : vector<2x1x2x192xbf16> to vector<2x2x192xbf16>
    %c0_10 = arith.constant 0 : index
    %c0_11 = arith.constant 0 : index
    %c0_12 = arith.constant 0 : index
    %11 = vector.load %arg15[%c0_10, %c0_11, %c0_12] : memref<2x10x192xbf16, #tpu.memory_space<vmem>>, vector<2x2x192xbf16>
    tpu.vector_store %arg15[%c0_10, %c0_11, %c0_12], %10 {strides = array<i32>} : memref<2x10x192xbf16, #tpu.memory_space<vmem>>, vector<2x2x192xbf16>,
    %12 = arith.truncf %4 : vector<2x8x192xf32> to vector<2x8x192xbf16>
    %c0_13 = arith.constant 0 : index
    %c2 = arith.constant 2 : index
    %c0_14 = arith.constant 0 : index
    %13 = vector.load %arg15[%c0_13, %c2, %c0_14] : memref<2x10x192xbf16, #tpu.memory_space<vmem>>, vector<2x8x192xbf16>
    tpu.vector_store %arg15[%c0_13, %c2, %c0_14], %12 {strides = array<i32>} : memref<2x10x192xbf16, #tpu.memory_space<vmem>>, vector<2x8x192xbf16>,
    %cst = arith.constant 0.000000e+00 : f32
    %14 = vector.broadcast %cst : f32 to vector<16x192xf32>
    %c0_15 = arith.constant 0 : index
    %c0_16 = arith.constant 0 : index
    %c0_17 = arith.constant 0 : index
    %15 = vector.load %arg15[%c0_15, %c0_16, %c0_17] : memref<2x10x192xbf16, #tpu.memory_space<vmem>>, vector<2x8x192xbf16>
    %16 = vector.shape_cast %15 : vector<2x8x192xbf16> to vector<16x192xbf16>
    %c3_i32 = arith.constant 3 : i32
    %17 = arith.muli %arg1, %c3_i32 : i32
    %c0_i32_18 = arith.constant 0 : i32
    %18 = arith.addi %17, %c0_i32_18 : i32
    %19 = arith.index_cast %18 : i32 to index
    %c0_19 = arith.constant 0 : index
    %c0_20 = arith.constant 0 : index
    %20 = vector.load %arg7[%19, %c0_19, %c0_20] : memref<36x192x192xbf16, #tpu.memory_space<vmem>>, vector<1x192x192xbf16>
    %21 = vector.shape_cast %20 : vector<1x192x192xbf16> to vector<192x192xbf16>
    %cst_21 = arith.constant dense<0.000000e+00> : vector<16x192xf32>
    %22 = tpu.matmul %16, %21, %cst_21 {dimension_numbers = #tpu.dot_dimension_numbers<[1], [0], [0], [1], [0, 0, 1, 1], [], []>} : vector<16x192xbf16>, vector<192x192xbf16>, vector<16x192xf32> -> vector<16x192xf32>
    %23 = arith.addf %14, %22 : vector<16x192xf32>
    %c0_22 = arith.constant 0 : index
    %c1 = arith.constant 1 : index
    %c0_23 = arith.constant 0 : index
    %24 = vector.load %arg15[%c0_22, %c1, %c0_23] : memref<2x10x192xbf16, #tpu.memory_space<vmem>>, vector<2x8x192xbf16>
    %25 = vector.shape_cast %24 : vector<2x8x192xbf16> to vector<16x192xbf16>
    %c3_i32_24 = arith.constant 3 : i32
    %26 = arith.muli %arg1, %c3_i32_24 : i32
    %c1_i32 = arith.constant 1 : i32
    %27 = arith.addi %26, %c1_i32 : i32
    %28 = arith.index_cast %27 : i32 to index
    %c0_25 = arith.constant 0 : index
    %c0_26 = arith.constant 0 : index
    %29 = vector.load %arg7[%28, %c0_25, %c0_26] : memref<36x192x192xbf16, #tpu.memory_space<vmem>>, vector<1x192x192xbf16>
    %30 = vector.shape_cast %29 : vector<1x192x192xbf16> to vector<192x192xbf16>
    %cst_27 = arith.constant dense<0.000000e+00> : vector<16x192xf32>
    %31 = tpu.matmul %25, %30, %cst_27 {dimension_numbers = #tpu.dot_dimension_numbers<[1], [0], [0], [1], [0, 0, 1, 1], [], []>} : vector<16x192xbf16>, vector<192x192xbf16>, vector<16x192xf32> -> vector<16x192xf32>
    %32 = arith.addf %23, %31 : vector<16x192xf32>
    %c0_28 = arith.constant 0 : index
    %c2_29 = arith.constant 2 : index
    %c0_30 = arith.constant 0 : index
    %33 = vector.load %arg15[%c0_28, %c2_29, %c0_30] : memref<2x10x192xbf16, #tpu.memory_space<vmem>>, vector<2x8x192xbf16>
    %34 = vector.shape_cast %33 : vector<2x8x192xbf16> to vector<16x192xbf16>
    %c3_i32_31 = arith.constant 3 : i32
    %35 = arith.muli %arg1, %c3_i32_31 : i32
    %c2_i32 = arith.constant 2 : i32
    %36 = arith.addi %35, %c2_i32 : i32
    %37 = arith.index_cast %36 : i32 to index
    %c0_32 = arith.constant 0 : index
    %c0_33 = arith.constant 0 : index
    %38 = vector.load %arg7[%37, %c0_32, %c0_33] : memref<36x192x192xbf16, #tpu.memory_space<vmem>>, vector<1x192x192xbf16>
    %39 = vector.shape_cast %38 : vector<1x192x192xbf16> to vector<192x192xbf16>
    %cst_34 = arith.constant dense<0.000000e+00> : vector<16x192xf32>
    %40 = tpu.matmul %34, %39, %cst_34 {dimension_numbers = #tpu.dot_dimension_numbers<[1], [0], [0], [1], [0, 0, 1, 1], [], []>} : vector<16x192xbf16>, vector<192x192xbf16>, vector<16x192xf32> -> vector<16x192xf32>
    %41 = arith.addf %32, %40 : vector<16x192xf32>
    %42 = arith.index_cast %arg1 : i32 to index
    %c0_35 = arith.constant 0 : index
    %c0_36 = arith.constant 0 : index
    %43 = vector.load %arg8[%42, %c0_35, %c0_36] : memref<12x1x192xf32, #tpu.memory_space<vmem>>, vector<1x1x192xf32>
    %44 = vector.shape_cast %43 : vector<1x1x192xf32> to vector<1x192xf32>
    %45 = vector.broadcast %44 : vector<1x192xf32> to vector<16x192xf32>
    %46 = arith.addf %41, %45 : vector<16x192xf32>
    %cst_37 = arith.constant dense<0.000000e+00> : vector<16xf32>
    %47 = vector.multi_reduction <add>, %46, %cst_37 [1] : vector<16x192xf32> to vector<16xf32>
    %48 = vector.shape_cast %47 : vector<16xf32> to vector<16x1xf32>
    %cst_38 = arith.constant 1.920000e+02 : f32
    %49 = vector.broadcast %cst_38 : f32 to vector<16x1xf32>
    %50 = arith.divf %48, %49 : vector<16x1xf32>
    %51 = vector.broadcast %50 : vector<16x1xf32> to vector<16x192xf32>
    %52 = arith.subf %46, %51 : vector<16x192xf32>
    %53 = arith.mulf %52, %52 : vector<16x192xf32>
    %cst_39 = arith.constant dense<0.000000e+00> : vector<16xf32>
    %54 = vector.multi_reduction <add>, %53, %cst_39 [1] : vector<16x192xf32> to vector<16xf32>
    %55 = vector.shape_cast %54 : vector<16xf32> to vector<16x1xf32>
    %cst_40 = arith.constant 1.920000e+02 : f32
    %56 = vector.broadcast %cst_40 : f32 to vector<16x1xf32>
    %57 = arith.divf %55, %56 : vector<16x1xf32>
    %cst_41 = arith.constant 9.99999974E-6 : f32
    %58 = vector.broadcast %cst_41 : f32 to vector<16x1xf32>
    %59 = arith.addf %57, %58 : vector<16x1xf32>
    %60 = math.rsqrt %59 : vector<16x1xf32>
    %61 = vector.broadcast %60 : vector<16x1xf32> to vector<16x192xf32>
    %62 = arith.mulf %52, %61 : vector<16x192xf32>
    %63 = arith.index_cast %arg1 : i32 to index
    %c0_42 = arith.constant 0 : index
    %c0_43 = arith.constant 0 : index
    %64 = vector.load %arg9[%63, %c0_42, %c0_43] : memref<12x1x192xf32, #tpu.memory_space<vmem>>, vector<1x1x192xf32>
    %65 = vector.shape_cast %64 : vector<1x1x192xf32> to vector<1x192xf32>
    %66 = vector.broadcast %65 : vector<1x192xf32> to vector<16x192xf32>
    %67 = arith.mulf %62, %66 : vector<16x192xf32>
    %68 = arith.index_cast %arg1 : i32 to index
    %c0_44 = arith.constant 0 : index
    %c0_45 = arith.constant 0 : index
    %69 = vector.load %arg10[%68, %c0_44, %c0_45] : memref<12x1x192xf32, #tpu.memory_space<vmem>>, vector<1x1x192xf32>
    %70 = vector.shape_cast %69 : vector<1x1x192xf32> to vector<1x192xf32>
    %71 = vector.broadcast %70 : vector<1x192xf32> to vector<16x192xf32>
    %72 = arith.addf %67, %71 : vector<16x192xf32>
    %cst_46 = arith.constant 0.000000e+00 : f32
    %73 = vector.broadcast %cst_46 : f32 to vector<16x192xf32>
    %74 = arith.maximumf %72, %73 : vector<16x192xf32>
    %cst_47 = arith.constant 0.000000e+00 : f32
    %75 = vector.broadcast %cst_47 : f32 to vector<16x192xf32>
    %76 = arith.cmpf ole, %72, %75 : vector<16x192xf32>
    %77 = arith.extui %76 : vector<16x192xi1> to vector<16x192xi8>
    %78 = vector.shape_cast %77 : vector<16x192xi8> to vector<2x8x192xi8>
    %c0_48 = arith.constant 0 : index
    %c0_49 = arith.constant 0 : index
    %c0_50 = arith.constant 0 : index
    %c0_51 = arith.constant 0 : index
    %79 = vector.load %arg12[%c0_48, %c0_49, %c0_50, %c0_51] : memref<2x1x8x192xi8, #tpu.memory_space<vmem>>, vector<2x1x8x192xi8>
    %80 = vector.shape_cast %79 : vector<2x1x8x192xi8> to vector<2x8x192xi8>
    %81 = vector.shape_cast %78 : vector<2x8x192xi8> to vector<2x1x8x192xi8>
    tpu.vector_store %arg12[%c0_48, %c0_49, %c0_50, %c0_51], %81 {strides = array<i32>} : memref<2x1x8x192xi8, #tpu.memory_space<vmem>>, vector<2x1x8x192xi8>,
    %82 = arith.addf %3, %74 : vector<16x192xf32>
    %c0_52 = arith.constant 0 : index
    %c0_53 = arith.constant 0 : index
    %83 = vector.load %arg14[%c0_52, %c0_53] : memref<16x192xf32, #tpu.memory_space<vmem>>, vector<16x192xf32>
    tpu.vector_store %arg14[%c0_52, %c0_53], %82 {strides = array<i32>} : memref<16x192xf32, #tpu.memory_space<vmem>>, vector<16x192xf32>,
    %c11_i32 = arith.constant 11 : i32
    %84 = arith.cmpi eq, %arg1, %c11_i32 : i32
    %85 = arith.extui %84 : i1 to i32
    %c0_i32_54 = arith.constant 0 : i32
    %86 = arith.cmpi ne, %85, %c0_i32_54 : i32
    scf.if %86 {
      %87 = vector.shape_cast %82 : vector<16x192xf32> to vector<2x8x192xf32>
      %88 = arith.truncf %87 : vector<2x8x192xf32> to vector<2x8x192xbf16>
      %c0_55 = arith.constant 0 : index
      %c0_56 = arith.constant 0 : index
      %c0_57 = arith.constant 0 : index
      %89 = vector.load %arg11[%c0_55, %c0_56, %c0_57] : memref<2x8x192xbf16, #tpu.memory_space<vmem>>, vector<2x8x192xbf16>
      tpu.vector_store %arg11[%c0_55, %c0_56, %c0_57], %88 {strides = array<i32>} : memref<2x8x192xbf16, #tpu.memory_space<vmem>>, vector<2x8x192xbf16>,
    } else {
    }
    return
  }
  func.func @transform_0(%arg0: i32, %arg1: i32) -> (i32, i32, i32) {
    %c0_i32 = arith.constant 0 : i32
    %c0_i32_0 = arith.constant 0 : i32
    %c0_i32_1 = arith.constant 0 : i32
    return %arg0, %c0_i32, %c0_i32_0 : i32, i32, i32
  }
  func.func @transform_1(%arg0: i32, %arg1: i32) -> (i32, i32, i32) {
    %c0_i32 = arith.constant 0 : i32
    %c0_i32_0 = arith.constant 0 : i32
    %c0_i32_1 = arith.constant 0 : i32
    return %arg0, %c0_i32, %c0_i32_0 : i32, i32, i32
  }
  func.func @transform_2(%arg0: i32, %arg1: i32) -> (i32, i32, i32, i32) {
    %c0_i32 = arith.constant 0 : i32
    %c0_i32_0 = arith.constant 0 : i32
    %c0_i32_1 = arith.constant 0 : i32
    return %arg0, %arg1, %c0_i32, %c0_i32_0 : i32, i32, i32, i32
  }
  func.func @transform_3(%arg0: i32, %arg1: i32) -> (i32, i32) {
    %c0_i32 = arith.constant 0 : i32
    %c0_i32_0 = arith.constant 0 : i32
    %c0_i32_1 = arith.constant 0 : i32
    return %c0_i32, %c0_i32_0 : i32, i32
  }
  func.func @transform_4(%arg0: i32, %arg1: i32) -> (i32, i32) {
    %c0_i32 = arith.constant 0 : i32
    %c0_i32_0 = arith.constant 0 : i32
    %c0_i32_1 = arith.constant 0 : i32
    return %c0_i32, %c0_i32_0 : i32, i32
  }
  func.func @transform_5(%arg0: i32, %arg1: i32) -> (i32, i32, i32) {
    %c0_i32 = arith.constant 0 : i32
    %c0_i32_0 = arith.constant 0 : i32
    %c0_i32_1 = arith.constant 0 : i32
    %c0_i32_2 = arith.constant 0 : i32
    return %c0_i32, %c0_i32_0, %c0_i32_1 : i32, i32, i32
  }
  func.func @transform_6(%arg0: i32, %arg1: i32) -> (i32, i32, i32) {
    %c0_i32 = arith.constant 0 : i32
    %c0_i32_0 = arith.constant 0 : i32
    %c0_i32_1 = arith.constant 0 : i32
    %c0_i32_2 = arith.constant 0 : i32
    return %c0_i32, %c0_i32_0, %c0_i32_1 : i32, i32, i32
  }
  func.func @transform_7(%arg0: i32, %arg1: i32) -> (i32, i32, i32) {
    %c0_i32 = arith.constant 0 : i32
    %c0_i32_0 = arith.constant 0 : i32
    %c0_i32_1 = arith.constant 0 : i32
    %c0_i32_2 = arith.constant 0 : i32
    return %c0_i32, %c0_i32_0, %c0_i32_1 : i32, i32, i32
  }
  func.func @transform_8(%arg0: i32, %arg1: i32) -> (i32, i32, i32) {
    %c0_i32 = arith.constant 0 : i32
    %c0_i32_0 = arith.constant 0 : i32
    %c0_i32_1 = arith.constant 0 : i32
    %c0_i32_2 = arith.constant 0 : i32
    return %c0_i32, %c0_i32_0, %c0_i32_1 : i32, i32, i32
  }
  func.func @transform_9(%arg0: i32, %arg1: i32) -> (i32, i32, i32) {
    %c0_i32 = arith.constant 0 : i32
    %c0_i32_0 = arith.constant 0 : i32
    %c0_i32_1 = arith.constant 0 : i32
    return %arg0, %c0_i32, %c0_i32_0 : i32, i32, i32
  }
  func.func @transform_10(%arg0: i32, %arg1: i32) -> (i32, i32, i32, i32) {
    %c0_i32 = arith.constant 0 : i32
    %c0_i32_0 = arith.constant 0 : i32
    %c0_i32_1 = arith.constant 0 : i32
    return %arg0, %arg1, %c0_i32, %c0_i32_0 : i32, i32, i32, i32
  }
  func.func @transform_11(%arg0: i32, %arg1: i32) -> (i32, i32, i32, i32) {
    %c0_i32 = arith.constant 0 : i32
    %c0_i32_0 = arith.constant 0 : i32
    %c0_i32_1 = arith.constant 0 : i32
    return %arg0, %arg1, %c0_i32, %c0_i32_0 : i32, i32, i32, i32
  }
}

</mosaic_0001>

<bundles_post_ra>
// kernel: tpu_custom_call.1
= control target key start
LH: loop header
LB: loop body
LE: loop exit
PB: predicated region body
PF: predicated region fallthrough
CT: control target
= control target key end

     0   :  { %s3676_s0 = inlined_call_operand.hbm [shape: bf16[2,8,128], index: 0, kind: input, shape index: {}]   ;;  %s3677_s1 = inlined_call_operand.vmem [shape: f32[2,8,1], index: 1, kind: input, shape index: {}]   ;;  %s3678_s2 = inlined_call_operand.hbm [shape: bf16[2,12,2,192], index: 2, kind: input, shape index: {}]   ;;  %s3679_s3 = inlined_call_operand.vmem [shape: bf16[128,192], index: 3, kind: input, shape index: {}]   ;;  %s3680_s4 = inlined_call_operand.hbm [shape: f32[1,192], index: 4, kind: input, shape index: {}]   ;;  %s3681_s5 = inlined_call_operand.hbm [shape: bf16[36,192,192], index: 5, kind: input, shape index: {}]   ;;  %s3682_s6 = inlined_call_operand.hbm [shape: f32[12,1,192], index: 6, kind: input, shape index: {}]   ;;  %s3683_s7 = inlined_call_operand.hbm [shape: f32[12,1,192], index: 7, kind: input, shape index: {}]   ;;  %s3684_s8 = inlined_call_operand.hbm [shape: f32[12,1,192], index: 8, kind: input, shape index: {}]   ;;  %s3685_s9 = inlined_call_operand.hbm [shape: bf16[2,8,192], index: 9, kind: output, shape index: {0}]   ;;  %s3686_s10 = inlined_call_operand.hbm [shape: s8[2,12,8,192], index: 10, kind: output, shape index: {1}]   ;;  %s3687_s11 = inlined_call_operand.hbm [shape: f32[2,12,2,192], index: 11, kind: output, shape index: {2}]  }
   0x1   :  { %3692 = sst [smem:[#allocation27_spill]] %s3676_s0 }
   0x2   :  { %3693 = sst [smem:[#allocation28_spill]] %s3677_s1 }
   0x3   :  { %3694 = sst [smem:[#allocation29_spill]] %s3678_s2 }
   0x4   :  { %3695 = sst [smem:[#allocation30_spill]] %s3679_s3 }
   0x5   :  { %3696 = sst [smem:[#allocation31_spill]] %s3680_s4 }
   0x6   :  { %3697 = sst [smem:[#allocation32_spill]] %s3681_s5 }
   0x7   :  { %3698 = sst [smem:[#allocation33_spill]] %s3682_s6 }
   0x8   :  { %3699 = sst [smem:[#allocation34_spill]] %s3683_s7 }
   0x9   :  { %3700 = sst [smem:[#allocation35_spill]] %s3684_s8 }
   0xa   :  { %3701 = sst [smem:[#allocation36_spill]] %s3685_s9 }
   0xb   :  { %3702 = sst [smem:[#allocation37_spill]] %s3686_s10 }
   0xc   :  { %3703 = sst [smem:[#allocation38_spill]] %s3687_s11 }
   0xd   :  { %17 = vsyncpa [#allocation5], 0 }
   0xe   :  { %18 = vsyncpa [#allocation8], 0 }
   0xf   :  { %20 = vsyncpa [#allocation8 + $0x1], 0 }
  0x10   :  { %21 = vsyncpa [#allocation11], 0 }
  0x11   :  { %22 = vsyncpa [#allocation14], 0 }
  0x12   :  { %23 = vsyncpa [#allocation6], 0 }
  0x13   :  { %24 = vsyncpa [#allocation18], 0 }
  0x14   :  { %26 = vsyncpa [#allocation18 + $0x1], 0  ;;  %s3091_s17 = smov 0   ;;  %s3093_s18 = smov 0  }
  0x15   :  { %s3095_s19 = smov 0   ;;  %s3097_s20 = smov 0  }
  0x16   :  { %s3099_s21 = smov 0   ;;  %s3101_s22 = smov 0  }
  0x17 LB: > { %s3704_s4 = sld [smem:[#allocation31_spill]]  ;;  %s3125_s26 = sadd.s32 4294967295, %s3007_s22   ;;  %s3007_s22 = sphi %s3101_s22, %s32_s22   ;;  %s3003_s21 = sphi %s3099_s21, %s3735_s21   ;;  %s2999_s20 = sphi %s3097_s20, %s3734_s20   ;;  %s2995_s19 = sphi %s3095_s19, %s3733_s19   ;;  %s2991_s18 = sphi %s3093_s18, %s3732_s18   ;;  %s2987_s17 = sphi %s3091_s17, %s3731_s17  }
  0x18   : > { %p1930_p0 = scmp.ge.s32.totalorder %s3007_s22, 1  ;;  %p119_p1 = scmp.eq.s32.totalorder %s3125_s26, 0 }
  0x19   : > { %p337_p2 = scmp.lt.s32.totalorder %s3007_s22, 13  ;;  %s3009_s28 = smov [#allocation9]  }
  0x1a   : > { %s380_s29 = sshll.u32 %s3009_s28, 4  ;;  %s3706_s5 = sld [smem:[#allocation32_spill]]  ;;  %s381_s29 = int_to_ptr.vmem [resolvable:$true] %s380_s29 }
  0x1b   : > { %p3130_p3 = pnand %p1930_p0, %p337_p2  ;;  %s3010_s15 = smov [#allocation10]  }
  0x1c   : > { %s391_s16 = sshll.u32 %s3010_s15, 4  ;;  %s3011_s23 = smov 128   ;;  %s392_s16 = int_to_ptr.vmem [resolvable:$true] %s391_s16 }
  0x1d   : > { %s378_s25 = sshll.u32 %s3704_s4, 4  ;;  %p2516_p4 = pneg %p3130_p3  ;;  %s379_s25 = int_to_ptr.hbm [resolvable:$true] %s378_s25 }
  0x1e   : > { %s3012_s24 = smov 8   ;;  %s3708_s7 = sld [smem:[#allocation34_spill]] }
  0x1f   : > { %p3141_p5 = pnand %p2516_p4, %p119_p1  ;;  %s3013_s4 = smov [#allocation13]  }
  0x20   : > { %s389_s13 = sshll.u32 %s3706_s5, 4  ;;  %s419_s5 = sshll.u32 %s3013_s4, 4  ;;  %s390_s13 = int_to_ptr.hbm [resolvable:$true] %s389_s13  ;;  %s420_s5 = int_to_ptr.vmem [resolvable:$true] %s419_s5 }
  0x21   : > { %2522 = dma.hbm_to_vmem [thread:$0]  (!%p3141_p5), %s379_s25, 32, %s381_s29, [#allocation8]  }
  0x22   : > { %2525 = dma.hbm_to_vmem [thread:$0]  (!%p3141_p5), %s390_s13, 110592, %s392_s16, [#allocation11], %s3011_s23, %s3011_s23, %s3012_s24  }
  0x23   : > { %s3689_s9 = smov 32   ;;  %s3690_s11 = smov 2  }
  0x24   : > { %s417_s12 = sshll.u32 %s3708_s7, 4  ;;  %s3709_s0 = sld [smem:[#allocation27_spill]]  ;;  %s418_s12 = int_to_ptr.hbm [resolvable:$true] %s417_s12 }
  0x25   : > { %2531 = dma.hbm_to_vmem [thread:$0]  (!%p3141_p5), %s418_s12, 384, %s420_s5, [#allocation14], %s3689_s9, %s3689_s9, %s3690_s11  }
  0x26   : > { %s3016_s15 = smov [#allocation4]   ;;  %s3017_s4 = smov 64  }
  0x27   : > { %s353_s16 = sshll.u32 %s3016_s15, 4  ;;  %s3018_s23 = smov 4   ;;  %s354_s16 = int_to_ptr.vmem [resolvable:$true] %s353_s16 }
  0x28   : > { %s3710_s6 = sld [smem:[#allocation33_spill]]  ;;  %s3019_s30 = smov [#allocation12]  }
  0x29   : > { %s405_s12 = sshll.u32 %s3019_s30, 4  ;;  %s3711_s8 = sld [smem:[#allocation35_spill]]  ;;  %s406_s12 = int_to_ptr.vmem [resolvable:$true] %s405_s12 }
  0x2a   : > { %s351_s13 = sshll.u32 %s3709_s0, 4  ;;  %s105_s24 = sadd.s32 1, %s2995_s19  ;;  %s352_s13 = int_to_ptr.hbm [resolvable:$true] %s351_s13 }
  0x2b   : > { %2519 = dma.hbm_to_vmem [thread:$0]  (!%p3141_p5), %s352_s13, 128, %s354_s16, [#allocation5], %s3017_s4, %s3017_s4, %s3018_s23  }
  0x2c   : > { %s3020_s13 = smov [#allocation15]   ;;  %s3691_s4 = sadd.s32 4294967294, %s3007_s22  }
  0x2d   : > { %s433_s16 = sshll.u32 %s3020_s13, 4  ;;  %s41_s23 = sadd.s32 1, %s3003_s21  ;;  %s434_s16 = int_to_ptr.vmem [resolvable:$true] %s433_s16 }
  0x2e   : > { %s403_s5 = sshll.u32 %s3710_s6, 4  ;;  %p42_p6 = scmp.ge.s32.totalorder %s41_s23, 12  ;;  %s404_s5 = int_to_ptr.hbm [resolvable:$true] %s403_s5 }
  0x2f   : > { %s431_s15 = sshll.u32 %s3711_s8, 4  ;;  %p112_p7 = scmp.ne.s32.totalorder %s2995_s19, %s2991_s18  ;;  %s432_s15 = int_to_ptr.hbm [resolvable:$true] %s431_s15 }
  0x30   : > { %2528 = dma.hbm_to_vmem [thread:$0]  (!%p3141_p5), %s404_s5, 384, %s406_s12, [#allocation11], %s3689_s9, %s3689_s9, %s3690_s11  }
  0x31   : > { %2534 = dma.hbm_to_vmem [thread:$0]  (!%p3141_p5), %s432_s15, 384, %s434_s16, [#allocation14], %s3689_s9, %s3689_s9, %s3690_s11  }
  0x32   : > { %p113_p8 = scmp.eq.s32.totalorder %s3007_s22, 0  ;;  %s3737_s23 = smov (%p42_p6, %s41_s23), 0 }
  0x33   : > { %p118_p10 = scmp.ne.s32.totalorder %s2991_s18, %s2987_s17  ;;  %s101_s28 = ssub.s32 %s3003_s21, %s3737_s23 }
  0x34   : > { %p3186_p9 = por %p113_p8, %p112_p7  ;;  %p296_p11 = scmp.eq.s32.totalorder %s3125_s26, 11 }
  0x35   : > { %p103_p12 = scmp.eq.s32.totalorder %s101_s28, 0  ;;  %p3197_p13 = por %p119_p1, %p118_p10 }
  0x36   : > { %p3203_p0 = por %p296_p11, %p112_p7  ;;  %p302_p2 = scmp.eq.s32.totalorder %s3691_s4, 11 }
  0x37   : > { %s3210_s12 = scalar_select %p103_p12, %s2995_s19, %s105_s24  }
  0x38   : > { %p3212_p4 = por %p302_p2, %p118_p10  ;;  %p2552_p5 = scmp.lt.s32.totalorder %s3007_s22, 12 }
  0x39   : > { %s447_s25 = sand.u32 1, %s3007_s22   ;;  %s449_s29 = sand.u32 1, %s2995_s19  }
  0x3a   : > { %s1939_s15 = sshll.u32 %s449_s29, 2  ;;  %s1940_s13 = sshll.u32 %s3003_s21, 1 }
  0x3b   : > { %s3716_s2 = sld [smem:[#allocation29_spill]]  ;;  %s451_s11 = scalar_lea.vmem [#allocation7], %s1939_s15 }
  0x3c   : > { %s461_s0 = sshll.u32 %s451_s11, 4  ;;  %p2536_p6 = pnand %p2552_p5, %p3186_p9  ;;  %s462_s0 = int_to_ptr.vmem [resolvable:$true] %s461_s0 }
  0x3d   : > { %s448_s24 = scalar_lea.sflag [#allocation8], %s447_s25  ;;  %s3021_s4 = smov 384  }
  0x3e   : > { %s3717_s7 = smov 2   ;;  %s3718_s8 = smov 32  }
  0x3f   : > { %473 = sbr.rel (%p3130_p3) target bundleno = 828 (0x33c), region = 56 }
  0x41   : > { %s458_s9 = scalar_lea.hbm %s3716_s2, %s1940_s13 }
  0x42   : > { %s459_s6 = sshll.u32 %s458_s9, 4  ;;  %s460_s6 = int_to_ptr.hbm [resolvable:$true] %s459_s6 }
  0x43   : > { %2538 = dma.hbm_to_vmem [thread:$0]  (!%p2536_p6), %s460_s6, 64, %s462_s0, %s448_s24, %s3021_s4, %s3718_s8, %s3717_s7  }
  0x44   : > { %2958 = dma.done.wait (%p119_p1), [#allocation5], 128  }
  0x45   : > { %2960 = vsyncadd (%p119_p1), [#allocation5], 4294967168  ;;  %s480_s9 = sand.u32 1, %s3125_s26   ;;  %s482_s11 = sand.u32 1, %s2991_s18  }
  0x46   : > { %s3235_s14 = sshll.u32 %s482_s11, 2  ;;  %s481_s0 = scalar_lea.sflag [#allocation8], %s480_s9 }
  0x47   : > { %s484_s6 = scalar_lea.vmem [#allocation7], %s3235_s14 }
  0x48   : > { %2962 = dma.done.wait (%p3197_p13), %s481_s0, 64  }
  0x49   : > { %2964 = vsyncadd (%p3197_p13), %s481_s0, 4294967232 }
  0x4a   : > { %2966 = dma.done.wait (%p119_p1), [#allocation8], 32  }
  0x4b   : > { %2968 = vsyncadd (%p119_p1), [#allocation8], 4294967264 }
  0x4c   : > { %2970 = dma.done.wait (%p119_p1), [#allocation11], 110976  }
  0x4d   : > { %2972 = vsyncadd (%p119_p1), [#allocation11], 4294856320 }
  0x4e   : > { %2974 = dma.done.wait (%p119_p1), [#allocation14], 768  }
  0x4f   : > { %2976 = vsyncadd (%p119_p1), [#allocation14], 4294966528  ;;  %s1949_s7 = sshll.u32 %s482_s11, 3  ;;  %p1951_p3 = scmp.ne.s32.totalorder %s2999_s20, 0 }
  0x50   : > { %s3256_s8 = scalar_lea.vmem [#allocation17], %s1949_s7  ;;  %s3258_s27 = scalar_lea.vmem [#allocation19], %s1949_s7 }
  0x51   : > { %576 = sbr.rel (%p1951_p3) target bundleno = 259 (0x103), region = 88  ;;  %s3719_s3 = sld [smem:[#allocation30_spill]] (!%p1951_p3) }
  0x52   : > { %s3720_s1 = sld [smem:[#allocation28_spill]] (!%p1951_p3) }
  0x56   : > { %v3022_v23 = vmov 0   ;;  %v2388_v51 = vld [vmem:[#allocation4] sm:$0xff]  ;;  %v597_v52 = vld [vmem:[#allocation9] sm:$0x3]  ;;  %vm732_vm0 = vcmask 523264  }
  0x57   : > { %v2014_v0 = vld [vmem:[%s3719_s3 + $0x70] sm:$0xf]  ;;  %v2404_v1 = vld [vmem:[%s3719_s3 + $0x74] sm:$0xf0]  ;;  %v2403_v2 = vld [vmem:[%s3719_s3 + $0x74] sm:$0xf]  ;;  %2632 = vset.pattern.permute.xlu0 %v3022_v23 }
  0x58   : > { %v2015_v3 = vor.u32 %v2404_v1, %v2014_v0  ;;  %v2016_v4 = vld [vmem:[%s3719_s3 + $0x78] sm:$0xf0]  ;;  %v2006_v5 = vld [vmem:[%s3719_s3 + $0x60] sm:$0xf]  ;;  %v2402_v6 = vld [vmem:[%s3719_s3 + $0x64] sm:$0xf0] }
  0x59   : > { %v2019_v7 = vor.u32 %v2403_v2, %v2016_v4  ;;  %v2401_v8 = vld [vmem:[%s3719_s3 + $0x64] sm:$0xf]  ;;  %v2008_v9 = vld [vmem:[%s3719_s3 + $0x68] sm:$0xf0]  ;;  %v2007_v10 = vor.u32 %v2402_v6, %v2006_v5  ;;  %v1998_v12 = vld [vmem:[%s3719_s3 + $0x50] sm:$0xf] }
  0x5a   : > { %703 = vmatpush.bf16.msra.mxu0 %v2015_v3  ;;  %v2011_v11 = vor.u32 %v2401_v8, %v2008_v9  ;;  %v2400_v13 = vld [vmem:[%s3719_s3 + $0x54] sm:$0xf0]  ;;  %v2399_v14 = vld [vmem:[%s3719_s3 + $0x54] sm:$0xf]  ;;  %v2000_v15 = vld [vmem:[%s3719_s3 + $0x58] sm:$0xf0] }
  0x5b   : > { %717 = vmatpush.bf16.msra.mxu1 %v2019_v7  ;;  %v1999_v16 = vor.u32 %v2400_v13, %v1998_v12  ;;  %v2003_v17 = vor.u32 %v2399_v14, %v2000_v15  ;;  %v1990_v18 = vld [vmem:[%s3719_s3 + $0x40] sm:$0xf]  ;;  %v2398_v19 = vld [vmem:[%s3719_s3 + $0x44] sm:$0xf0]  ;;  %v2397_v20 = vld [vmem:[%s3719_s3 + $0x44] sm:$0xf] }
  0x5c   : > { %v1992_v21 = vld [vmem:[%s3719_s3 + $0x48] sm:$0xf0]  ;;  %v1991_v22 = vor.u32 %v2398_v19, %v1990_v18  ;;  %v595_v24 = vld [vmem:[%s3720_s1] sm:$0xff]  ;;  %v1982_v26 = vld [vmem:[%s3719_s3 + $0x30] sm:$0xf]  ;;  %v609_v53 = vperm.slane %v597_v52, 0 }
  0x5d   : > { %v1995_v25 = vor.u32 %v2397_v20, %v1992_v21  ;;  %v2396_v27 = vld [vmem:[%s3719_s3 + $0x34] sm:$0xf0]  ;;  %600 = vperm.xlu0 %2632, %v595_v24   ;;  %v2395_v28 = vld [vmem:[%s3719_s3 + $0x34] sm:$0xf]  ;;  %v1984_v29 = vld [vmem:[%s3719_s3 + $0x38] sm:$0xf0] }
  0x5e   : > { %704 = vmatpush.bf16.msra.mxu0 %v2007_v10  ;;  %v1983_v30 = vor.u32 %v2396_v27, %v1982_v26  ;;  %v1987_v31 = vor.u32 %v2395_v28, %v1984_v29  ;;  %v1974_v32 = vld [vmem:[%s3719_s3 + $0x20] sm:$0xf]  ;;  %v2394_v33 = vld [vmem:[%s3719_s3 + $0x24] sm:$0xf0]  ;;  %v2393_v34 = vld [vmem:[%s3719_s3 + $0x24] sm:$0xf] }
  0x5f   : > { %718 = vmatpush.bf16.msra.mxu1 %v2011_v11  ;;  %v1976_v35 = vld [vmem:[%s3719_s3 + $0x28] sm:$0xf0]  ;;  %v1975_v37 = vor.u32 %v2394_v33, %v1974_v32  ;;  %v1966_v39 = vld [vmem:[%s3719_s3 + $0x10] sm:$0xf]  ;;  %v2392_v40 = vld [vmem:[%s3719_s3 + $0x14] sm:$0xf0] }
  0x60   : > { %v596_v36 = vld [vmem:[%s3720_s1 + $0x8] sm:$0xff]  ;;  %v1979_v38 = vor.u32 %v2393_v34, %v1976_v35  ;;  %v2391_v41 = vld [vmem:[%s3719_s3 + $0x14] sm:$0xf]  ;;  %v1968_v42 = vld [vmem:[%s3719_s3 + $0x18] sm:$0xf0]  ;;  %v1967_v43 = vor.u32 %v2392_v40, %v1966_v39  ;;  %v610_v54 = vperm.slane %v597_v52, 1 }
  0x61   : > { %v1971_v44 = vor.u32 %v2391_v41, %v1968_v42  ;;  %v1958_v45 = vld [vmem:[%s3719_s3] sm:$0xf]  ;;  %v2390_v46 = vld [vmem:[%s3719_s3 + $0x4] sm:$0xf0]  ;;  %v2389_v47 = vld [vmem:[%s3719_s3 + $0x4] sm:$0xf] }
  0x62   : > { %705 = vmatpush.bf16.msra.mxu0 %v1999_v16  ;;  %v1960_v48 = vld [vmem:[%s3719_s3 + $0x8] sm:$0xf0]  ;;  %v1959_v49 = vor.u32 %v2390_v46, %v1958_v45 }
  0x63   : > { %719 = vmatpush.bf16.msra.mxu1 %v2003_v17  ;;  %v1963_v50 = vor.u32 %v2389_v47, %v1960_v48 }
  0x65   : > { %605 = vperm.xlu0 %2632, %v596_v36  }
  0x66   : > { %706 = vmatpush.bf16.msra.mxu0 %v1991_v22 }
  0x67   : > { %720 = vmatpush.bf16.msra.mxu1 %v1995_v25 }
  0x6a   : > { %707 = vmatpush.bf16.msra.mxu0 %v1983_v30 }
  0x6b   : > { %721 = vmatpush.bf16.msra.mxu1 %v1987_v31 }
  0x6e   : > { %708 = vmatpush.bf16.msra.mxu0 %v1975_v37 }
  0x6f   : > { %722 = vmatpush.bf16.msra.mxu1 %v1979_v38 }
  0x72   : > { %709 = vmatpush.bf16.msra.mxu0 %v1967_v43 }
  0x73   : > { %723 = vmatpush.bf16.msra.mxu1 %v1971_v44 }
  0x76   : > { %710 = vmatpush.bf16.msra.mxu0 %v1959_v49 }
  0x77   : > { %724 = vmatpush.bf16.msra.mxu1 %v1963_v50 }
  0x79   : > { %711 = vmatmul.bf16.vlgmr.msra.gmra.mxu0 %v2388_v51 }
  0x7a   : > { %725 = vmatmul.bf16.vlgmr.msra.gmra.mxu1 %v2388_v51 }
  0xcf   : > { %v601_v55 = vpop.permute.xlu0 %600 }
  0xd0   : > { %v613_v56 = vmul.f32 %v609_v53, %v601_v55  ;;  %v614_v57 = vmul.f32 %v610_v54, %v601_v55 }
  0xd7   : > { %v606_v62 = vpop.permute.xlu0 %605 }
  0xd8   : > { %v615_v63 = vmul.f32 %v609_v53, %v606_v62  ;;  %v616_v0 = vmul.f32 %v610_v54, %v606_v62 }
  0xf6   : > { %v712_v58 = vpop.f32.mrf.mxu0 }
  0xf7   : > { %v713_v59 = vadd.f32 %v712_v58, %v613_v56  ;;  %v726_v60 = vpop.f32.mrf.mxu1 }
  0xf8   : > { %v727_v61 = vadd.f32 %v726_v60, %v614_v57 }
  0xf9   : > { %731 = vst [vmem:[#allocation2] sm:$0xff] %v713_v59 }
  0xfa   : > { %733 = vst.msk [vmem:[#allocation2 + $0x8] sm:$0xff] %vm732_vm0, %v727_v61 }
  0xfe   : > { %v714_v1 = vpop.f32.mrf.mxu0 }
  0xff   : > { %v715_v2 = vadd.f32 %v714_v1, %v615_v63  ;;  %v728_v3 = vpop.f32.mrf.mxu1 }
 0x100   : > { %v729_v4 = vadd.f32 %v728_v3, %v616_v0 }
 0x101   : > { %734 = vst [vmem:[#allocation2 + $0x10] sm:$0xff] %v715_v2 }
 0x102   : > { %735 = vst.msk [vmem:[#allocation2 + $0x18] sm:$0xff] %vm732_vm0, %v729_v4 }
 0x103 PF: > { %s2407_s24 = smul.u32 576, %s2999_s20  ;;  %v3364_v5 = vld [vmem:[#allocation2] sm:$0xff]  ;;  %v3366_v6 = vld [vmem:[#allocation2 + $0x8] sm:$0xff]  ;;  %vm770_vm1 = vcmask 1040384   ;;  %vm771_vm2 = vcmask 520196   ;;  %vm787_vm3 = vcmask 1043457  }
 0x104   : > { %744 = vst.sshfl [vmem:[#allocation1] sm:$0xff pattern:$0x73625140] %v3364_v5  ;;  %v759_v2 = vld [vmem:[%s484_s6] sm:$0x3]  ;;  %vm788_vm4 = vcmask 523269   ;;  %vm3444_vm6 = vmor %vm771_vm2, %vm770_vm1 }
 0x105   : > { %745 = vst.sshfl [vmem:[#allocation1 + $0x8] sm:$0xff pattern:$0x73625140] %v3366_v6  ;;  %s3370_s11 = scalar_lea.vmem [#allocation10], %s2407_s24  ;;  %vm789_vm5 = vmor %vm788_vm4, %vm787_vm3  ;;  %vm826_vm7 = vsmask.f32 3328 }
 0x106   : > { %v2105_v7 = vld [vmem:[%s3370_s11 + $0x130] sm:$0xf]  ;;  %v2447_v8 = vld [vmem:[%s3370_s11 + $0x134] sm:$0xf0]  ;;  %v2446_v12 = vld [vmem:[%s3370_s11 + $0x134] sm:$0xf] }
 0x107   : > { %v2137_v9 = vld [vmem:[%s3370_s11 + $0x170] sm:$0xf]  ;;  %v2106_v10 = vor.u32 %v2447_v8, %v2105_v7  ;;  %v2455_v11 = vld [vmem:[%s3370_s11 + $0x174] sm:$0xf0]  ;;  %v2107_v13 = vld [vmem:[%s3370_s11 + $0x138] sm:$0xf0] }
 0x108   : > { %v2138_v14 = vor.u32 %v2455_v11, %v2137_v9  ;;  %v2110_v15 = vor.u32 %v2446_v12, %v2107_v13  ;;  %v2454_v16 = vld [vmem:[%s3370_s11 + $0x174] sm:$0xf]  ;;  %v2139_v17 = vld [vmem:[%s3370_s11 + $0x178] sm:$0xf0]  ;;  %v2097_v18 = vld [vmem:[%s3370_s11 + $0x120] sm:$0xf]  ;;  %v775_v13 = vpack.c.bf16 %v3366_v6, %v3364_v5 }
 0x109   : > { %1016 = vmatpush.bf16.msra.mxu0 %v2106_v10  ;;  %v2142_v19 = vor.u32 %v2454_v16, %v2139_v17  ;;  %v2445_v20 = vld [vmem:[%s3370_s11 + $0x124] sm:$0xf0]  ;;  %v2129_v21 = vld [vmem:[%s3370_s11 + $0x160] sm:$0xf]  ;;  %v2444_v25 = vld [vmem:[%s3370_s11 + $0x124] sm:$0xf] }
 0x10a   : > { %v2453_v22 = vld [vmem:[%s3370_s11 + $0x164] sm:$0xf0]  ;;  %1034 = vmatpush.bf16.msra.mxu1 %v2138_v14  ;;  %1044 = vmatpush.bf16.msra.mxu2 %v2110_v15  ;;  %v2098_v23 = vor.u32 %v2445_v20, %v2097_v18  ;;  %v2099_v26 = vld [vmem:[%s3370_s11 + $0x128] sm:$0xf0]  ;;  %v2452_v27 = vld [vmem:[%s3370_s11 + $0x164] sm:$0xf] }
 0x10b   : > { %v2130_v24 = vor.u32 %v2453_v22, %v2129_v21  ;;  %1062 = vmatpush.bf16.msra.mxu3 %v2142_v19  ;;  %v2102_v28 = vor.u32 %v2444_v25, %v2099_v26  ;;  %v2131_v29 = vld [vmem:[%s3370_s11 + $0x168] sm:$0xf0]  ;;  %v2089_v30 = vld [vmem:[%s3370_s11 + $0x110] sm:$0xf]  ;;  %v2443_v31 = vld [vmem:[%s3370_s11 + $0x114] sm:$0xf0] }
 0x10c   : > { %v2134_v32 = vor.u32 %v2452_v27, %v2131_v29  ;;  %v2121_v33 = vld [vmem:[%s3370_s11 + $0x150] sm:$0xf]  ;;  %v2451_v34 = vld [vmem:[%s3370_s11 + $0x154] sm:$0xf0]  ;;  %v2442_v35 = vld [vmem:[%s3370_s11 + $0x114] sm:$0xf]  ;;  %v2090_v36 = vor.u32 %v2443_v31, %v2089_v30 }
 0x10d   : > { %1017 = vmatpush.bf16.msra.mxu0 %v2098_v23  ;;  %v2091_v37 = vld [vmem:[%s3370_s11 + $0x118] sm:$0xf0]  ;;  %v2450_v38 = vld [vmem:[%s3370_s11 + $0x154] sm:$0xf]  ;;  %v2122_v40 = vor.u32 %v2451_v34, %v2121_v33  ;;  %v2081_v42 = vld [vmem:[%s3370_s11 + $0x100] sm:$0xf] }
 0x10e   : > { %v2123_v39 = vld [vmem:[%s3370_s11 + $0x158] sm:$0xf0]  ;;  %1035 = vmatpush.bf16.msra.mxu1 %v2130_v24  ;;  %1045 = vmatpush.bf16.msra.mxu2 %v2102_v28  ;;  %v2094_v41 = vor.u32 %v2442_v35, %v2091_v37  ;;  %v2441_v43 = vld [vmem:[%s3370_s11 + $0x104] sm:$0xf0]  ;;  %v2113_v44 = vld [vmem:[%s3370_s11 + $0x140] sm:$0xf] }
 0x10f   : > { %1063 = vmatpush.bf16.msra.mxu3 %v2134_v32  ;;  %v2126_v45 = vor.u32 %v2450_v38, %v2123_v39  ;;  %v2449_v46 = vld [vmem:[%s3370_s11 + $0x144] sm:$0xf0]  ;;  %v2440_v47 = vld [vmem:[%s3370_s11 + $0x104] sm:$0xf]  ;;  %v2083_v48 = vld [vmem:[%s3370_s11 + $0x108] sm:$0xf0]  ;;  %v2082_v52 = vor.u32 %v2441_v43, %v2081_v42 }
 0x110   : > { %v2448_v49 = vld [vmem:[%s3370_s11 + $0x144] sm:$0xf]  ;;  %v2115_v50 = vld [vmem:[%s3370_s11 + $0x148] sm:$0xf0]  ;;  %v2211_v51 = vld [vmem:[%s3370_s11 + $0x70] sm:$0xf]  ;;  %v2114_v56 = vor.u32 %v2449_v46, %v2113_v44  ;;  %v2086_v57 = vor.u32 %v2440_v47, %v2083_v48 }
 0x111   : > { %1018 = vmatpush.bf16.msra.mxu0 %v2090_v36  ;;  %v2423_v53 = vld [vmem:[%s3370_s11 + $0x74] sm:$0xf0]  ;;  %v2243_v54 = vld [vmem:[%s3370_s11 + $0xb0] sm:$0xf]  ;;  %v3412_v61 = vld [vmem:[#allocation2 + $0x18] sm:$0xff]  ;;  %v2118_v62 = vor.u32 %v2448_v49, %v2115_v50  ;;  %v779_v28 = vrot.slane %v775_v13, 7 }
 0x112   : > { %v2431_v55 = vld [vmem:[%s3370_s11 + $0xb4] sm:$0xf0]  ;;  %1036 = vmatpush.bf16.msra.mxu1 %v2122_v40  ;;  %1046 = vmatpush.bf16.msra.mxu2 %v2094_v41  ;;  %v2073_v58 = vld [vmem:[%s3370_s11 + $0xf0] sm:$0xf]  ;;  %v2212_v63 = vor.u32 %v2423_v53, %v2211_v51  ;;  %v2438_v0 = vld [vmem:[%s3370_s11 + $0xf4] sm:$0xf] }
 0x113   : > { %v2439_v59 = vld [vmem:[%s3370_s11 + $0xf4] sm:$0xf0]  ;;  %1064 = vmatpush.bf16.msra.mxu3 %v2126_v45  ;;  %v2075_v1 = vld [vmem:[%s3370_s11 + $0xf8] sm:$0xf0]  ;;  %v2244_v3 = vor.u32 %v2431_v55, %v2243_v54  ;;  %v2203_v4 = vld [vmem:[%s3370_s11 + $0x60] sm:$0xf] }
 0x114   : > { %v3410_v60 = vld [vmem:[#allocation2 + $0x10] sm:$0xff]  ;;  %v2421_v7 = vld [vmem:[%s3370_s11 + $0x64] sm:$0xf0]  ;;  %v2235_v8 = vld [vmem:[%s3370_s11 + $0xa0] sm:$0xf]  ;;  %v2074_v9 = vor.u32 %v2439_v59, %v2073_v58  ;;  %v2078_v15 = vor.u32 %v2438_v0, %v2075_v1  ;;  %v780_v34 = vrot.slane %v779_v28, 4 }
 0x115   : > { %1019 = vmatpush.bf16.msra.mxu0 %v2082_v52  ;;  %v2429_v10 = vld [vmem:[%s3370_s11 + $0xa4] sm:$0xf0]  ;;  %v2065_v11 = vld [vmem:[%s3370_s11 + $0xe0] sm:$0xf]  ;;  %v776_v14 = vpack.c.bf16 %v3412_v61, %v3410_v60  ;;  %v2436_v16 = vld [vmem:[%s3370_s11 + $0xe4] sm:$0xf]  ;;  %v2204_v20 = vor.u32 %v2421_v7, %v2203_v4 }
 0x116   : > { %v2437_v12 = vld [vmem:[%s3370_s11 + $0xe4] sm:$0xf0]  ;;  %1037 = vmatpush.bf16.msra.mxu1 %v2114_v56  ;;  %1047 = vmatpush.bf16.msra.mxu2 %v2086_v57  ;;  %v2067_v17 = vld [vmem:[%s3370_s11 + $0xe8] sm:$0xf0]  ;;  %v2195_v18 = vld [vmem:[%s3370_s11 + $0x50] sm:$0xf]  ;;  %v2236_v24 = vor.u32 %v2429_v10, %v2235_v8 }
 0x117   : > { %v760_v19 = vld [vmem:[%s484_s6 + $0x2] sm:$0x3]  ;;  %1065 = vmatpush.bf16.msra.mxu3 %v2118_v62  ;;  %v2419_v21 = vld [vmem:[%s3370_s11 + $0x54] sm:$0xf0]  ;;  %762 = vst [vmem:[#allocation1] ss:$4 sm:$0xff] %v759_v2  ;;  %v2066_v27 = vor.u32 %v2437_v12, %v2065_v11  ;;  %v2070_v30 = vor.u32 %v2436_v16, %v2067_v17 }
 0x118   : > { %v2227_v22 = vld [vmem:[%s3370_s11 + $0x90] sm:$0xf]  ;;  %v2427_v23 = vld [vmem:[%s3370_s11 + $0x94] sm:$0xf0]  ;;  %v781_v29 = vrot.slane %v776_v14, 7  ;;  %v2196_v32 = vor.u32 %v2419_v21, %v2195_v18  ;;  %vm1012_vm10 = vcmask 523264  }
 0x119   : > { %v2057_v25 = vld [vmem:[%s3370_s11 + $0xd0] sm:$0xf]  ;;  %v2435_v26 = vld [vmem:[%s3370_s11 + $0xd4] sm:$0xf0]  ;;  %1020 = vmatpush.bf16.msra.mxu0 %v2074_v9  ;;  %v2434_v31 = vld [vmem:[%s3370_s11 + $0xd4] sm:$0xf]  ;;  %v2228_v36 = vor.u32 %v2427_v23, %v2227_v22 }
 0x11a   : > { %1204 = vmatpush.bf16.msrb.mxu1 %v2212_v63  ;;  %748 = vst.sshfl [vmem:[#allocation1 + $0x20] sm:$0xff pattern:$0x73625140] %v3410_v60  ;;  %1048 = vmatpush.bf16.msra.mxu2 %v2078_v15  ;;  %v2059_v33 = vld [vmem:[%s3370_s11 + $0xd8] sm:$0xf0]  ;;  %v782_v35 = vrot.slane %v781_v29, 4  ;;  %v2058_v39 = vor.u32 %v2435_v26, %v2057_v25 }
 0x11b   : > { %1222 = vmatpush.bf16.msrb.mxu3 %v2244_v3  ;;  %749 = vst.sshfl [vmem:[#allocation1 + $0x28] sm:$0xff pattern:$0x73625140] %v3412_v61  ;;  %v2187_v38 = vld [vmem:[%s3370_s11 + $0x40] sm:$0xf]  ;;  %v2062_v42 = vor.u32 %v2434_v31, %v2059_v33  ;;  %vm1266_vm11 = vcmask 1042432  }
 0x11c   : > { %766 = vst [vmem:[#allocation1 + $0x20] ss:$4 sm:$0xff] %v760_v19  ;;  %v2417_v40 = vld [vmem:[%s3370_s11 + $0x44] sm:$0xf0]  ;;  %v2219_v41 = vld [vmem:[%s3370_s11 + $0x80] sm:$0xf] }
 0x11d   : > { %790 = vst.msk [vmem:[#allocation3] sm:$0xee] %vm789_vm5, %v779_v28  ;;  %1021 = vmatpush.bf16.msra.mxu0 %v2066_v27  ;;  %v2425_v43 = vld [vmem:[%s3370_s11 + $0x84] sm:$0xf0]  ;;  %v2188_v45 = vor.u32 %v2417_v40, %v2187_v38  ;;  %v2049_v47 = vld [vmem:[%s3370_s11 + $0xc0] sm:$0xf] }
 0x11e   : > { %1205 = vmatpush.bf16.msrb.mxu1 %v2204_v20  ;;  %791 = vst.msk [vmem:[#allocation3 + $0x8] sm:$0x11] %vm3444_vm6, %v780_v34  ;;  %1049 = vmatpush.bf16.msra.mxu2 %v2070_v30  ;;  %v763_v44 = vld [vmem:[#allocation1] sm:$0xff]  ;;  %v2220_v46 = vor.u32 %v2425_v43, %v2219_v41  ;;  %v2433_v48 = vld [vmem:[%s3370_s11 + $0xc4] sm:$0xf0]  ;;  %vm1267_vm12 = vcmask 1046532  }
 0x11f   : > { %1223 = vmatpush.bf16.msrb.mxu3 %v2236_v24  ;;  %792 = vst.msk [vmem:[#allocation3 + $0x10] sm:$0xee] %vm789_vm5, %v781_v29  ;;  %v2050_v49 = vor.u32 %v2433_v48, %v2049_v47  ;;  %v2432_v50 = vld [vmem:[%s3370_s11 + $0xc4] sm:$0xf]  ;;  %v2051_v51 = vld [vmem:[%s3370_s11 + $0xc8] sm:$0xf0]  ;;  %vm1268_vm13 = vmor %vm1266_vm11, %vm1267_vm12 }
 0x120   : > { %793 = vst.msk [vmem:[#allocation3 + $0x18] sm:$0x11] %vm3444_vm6, %v782_v35  ;;  %v2179_v52 = vld [vmem:[%s3370_s11 + $0x30] sm:$0xf]  ;;  %v2054_v54 = vor.u32 %v2432_v50, %v2051_v51  ;;  %v2415_v55 = vld [vmem:[%s3370_s11 + $0x34] sm:$0xf0] }
 0x121   : > { %773 = vst.msk [vmem:[#allocation3] sm:$0x11] %vm3444_vm6, %v763_v44  ;;  %1022 = vmatpush.bf16.msra.mxu0 %v2058_v39  ;;  %v2422_v56 = vld [vmem:[%s3370_s11 + $0x74] sm:$0xf]  ;;  %v2180_v57 = vor.u32 %v2415_v55, %v2179_v52  ;;  %v2213_v58 = vld [vmem:[%s3370_s11 + $0x78] sm:$0xf0] }
 0x122   : > { %1206 = vmatpush.bf16.msrb.mxu1 %v2196_v32  ;;  %1050 = vmatpush.bf16.msra.mxu2 %v2062_v42  ;;  %v2430_v59 = vld [vmem:[%s3370_s11 + $0xb4] sm:$0xf]  ;;  %v2216_v63 = vor.u32 %v2422_v56, %v2213_v58  ;;  %v2245_v0 = vld [vmem:[%s3370_s11 + $0xb8] sm:$0xf0]  ;;  %v2171_v3 = vld [vmem:[%s3370_s11 + $0x20] sm:$0xf] }
 0x123   : > { %1224 = vmatpush.bf16.msrb.mxu3 %v2228_v36  ;;  %v767_v53 = vld [vmem:[#allocation1 + $0x20] sm:$0xff]  ;;  %v2248_v2 = vor.u32 %v2430_v59, %v2245_v0  ;;  %v2413_v4 = vld [vmem:[%s3370_s11 + $0x24] sm:$0xf0]  ;;  %v2205_v11 = vld [vmem:[%s3370_s11 + $0x68] sm:$0xf0]  ;;  %s3571_s14 = sshll.u32 %s2999_s20, 1 }
 0x124   : > { %774 = vst.msk [vmem:[#allocation3 + $0x10] sm:$0x11] %vm3444_vm6, %v767_v53  ;;  %v2420_v7 = vld [vmem:[%s3370_s11 + $0x64] sm:$0xf]  ;;  %v2172_v10 = vor.u32 %v2413_v4, %v2171_v3  ;;  %v2237_v16 = vld [vmem:[%s3370_s11 + $0xa8] sm:$0xf0] }
 0x125   : > { %v3469_v62 = vld [vmem:[#allocation3 + $0x8] sm:$0x11]  ;;  %1023 = vmatpush.bf16.msra.mxu0 %v2050_v49  ;;  %v2208_v14 = vor.u32 %v2420_v7, %v2205_v11  ;;  %v2428_v15 = vld [vmem:[%s3370_s11 + $0xa4] sm:$0xf]  ;;  %vm827_vm8 = vsmask.f32 7440 }
 0x126   : > { %1207 = vmatpush.bf16.msrb.mxu1 %v2188_v45  ;;  %v839_v1 = vshll.u32 %v3469_v62, 16  ;;  %1051 = vmatpush.bf16.msra.mxu2 %v2054_v54  ;;  %v2240_v18 = vor.u32 %v2428_v15, %v2237_v16  ;;  %v2163_v23 = vld [vmem:[%s3370_s11 + $0x10] sm:$0xf]  ;;  %v2411_v26 = vld [vmem:[%s3370_s11 + $0x14] sm:$0xf0]  ;;  %vm3490_vm9 = vmor %vm826_vm7, %vm827_vm8  ;;  %s1496_s6 = scalar_lea.vmem [#allocation12], %s3571_s14 }
 0x127   : > { %1225 = vmatpush.bf16.msrb.mxu3 %v2220_v46  ;;  %v3476_v9 = vld [vmem:[#allocation3 + $0x18] sm:$0x11]  ;;  %v2418_v27 = vld [vmem:[%s3370_s11 + $0x54] sm:$0xf]  ;;  %v2164_v29 = vor.u32 %v2411_v26, %v2163_v23  ;;  %v2197_v30 = vld [vmem:[%s3370_s11 + $0x58] sm:$0xf0] }
 0x128   : > { %v794_v8 = vld [vmem:[#allocation3] sm:$0xff]  ;;  %v841_v17 = vrot.slane %v839_v1, 5  ;;  %v853_v22 = vshll.u32 %v3476_v9, 16  ;;  %v2426_v31 = vld [vmem:[%s3370_s11 + $0x94] sm:$0xf]  ;;  %v2200_v36 = vor.u32 %v2418_v27, %v2197_v30  ;;  %vm754_vm15 = vcmask 1041408  }
 0x129   : > { %1232 = vmatpush.bf16.msrb.mxu0 %v2216_v63  ;;  %v830_v12 = vshrl.u32 %v794_v8, 16  ;;  %v833_v13 = vshll.u32 %v794_v8, 16  ;;  %v2229_v32 = vld [vmem:[%s3370_s11 + $0x98] sm:$0xf0]  ;;  %v2155_v39 = vld [vmem:[%s3370_s11] sm:$0xf] }
 0x12a   : > { %1208 = vmatpush.bf16.msrb.mxu1 %v2180_v57  ;;  %1250 = vmatpush.bf16.msrb.mxu2 %v2248_v2  ;;  %v2232_v37 = vor.u32 %v2426_v31, %v2229_v32  ;;  %v2409_v40 = vld [vmem:[%s3370_s11 + $0x4] sm:$0xf0]  ;;  %v855_v42 = vrot.slane %v853_v22, 5  ;;  %v2416_v44 = vld [vmem:[%s3370_s11 + $0x44] sm:$0xf]  ;;  %vm755_vm0 = vcmask 519170  }
 0x12b   : > { %v795_v19 = vld [vmem:[#allocation3 + $0x10] sm:$0xff]  ;;  %v832_v20 = vrot.slane %v830_v12, 4  ;;  %v835_v21 = vrot.slane %v833_v13, 5  ;;  %v2156_v43 = vor.u32 %v2409_v40, %v2155_v39  ;;  %v2189_v46 = vld [vmem:[%s3370_s11 + $0x48] sm:$0xf0]  ;;  %vm3578_vm1 = vmor %vm755_vm0, %vm754_vm15  ;;  %s1568_s0 = scalar_lea.vmem [#allocation13], %s3571_s14 }
 0x12c   : > { %v844_v24 = vshrl.u32 %v795_v19, 16  ;;  %v847_v25 = vshll.u32 %v795_v19, 16  ;;  %v2424_v47 = vld [vmem:[%s3370_s11 + $0x84] sm:$0xf]  ;;  %v2221_v48 = vld [vmem:[%s3370_s11 + $0x88] sm:$0xf0]  ;;  %v2192_v50 = vor.u32 %v2416_v44, %v2189_v46 }
 0x12d   : > { %1233 = vmatpush.bf16.msrb.mxu0 %v2208_v14  ;;  %v836_v28 = vor.u32 %v835_v21, %v832_v20  ;;  %v2336_v52 = vld [vmem:[%s3370_s11 + $0x1f0] sm:$0xf]  ;;  %v2471_v53 = vld [vmem:[%s3370_s11 + $0x1f4] sm:$0xf0]  ;;  %v2224_v55 = vor.u32 %v2424_v47, %v2221_v48  ;;  %v2470_v56 = vld [vmem:[%s3370_s11 + $0x1f4] sm:$0xf] }
 0x12e   : > { %1209 = vmatpush.bf16.msrb.mxu1 %v2172_v10  ;;  %1251 = vmatpush.bf16.msrb.mxu2 %v2240_v18  ;;  %v846_v34 = vrot.slane %v844_v24, 4  ;;  %v849_v35 = vrot.slane %v847_v25, 5  ;;  %v2338_v58 = vld [vmem:[%s3370_s11 + $0x1f8] sm:$0xf0]  ;;  %v2414_v59 = vld [vmem:[%s3370_s11 + $0x34] sm:$0xf]  ;;  %v2337_v3 = vor.u32 %v2471_v53, %v2336_v52 }
 0x12f   : > { %v837_v38 = vrot.slane %v836_v28, 4  ;;  %v2181_v63 = vld [vmem:[%s3370_s11 + $0x38] sm:$0xf0]  ;;  %v2328_v4 = vld [vmem:[%s3370_s11 + $0x1e0] sm:$0xf]  ;;  %v2341_v13 = vor.u32 %v2470_v56, %v2338_v58  ;;  %s1579_s7 = scalar_lea.vmem [#allocation15], %s3571_s14 }
 0x130   : > { %v850_v41 = vor.u32 %v849_v35, %v846_v34  ;;  %v2184_v2 = vor.u32 %v2414_v59, %v2181_v63  ;;  %v2368_v7 = vld [vmem:[%s3370_s11 + $0x230] sm:$0xf]  ;;  %v2479_v8 = vld [vmem:[%s3370_s11 + $0x234] sm:$0xf0]  ;;  %v2469_v11 = vld [vmem:[%s3370_s11 + $0x1e4] sm:$0xf0] }
 0x131   : > { %1234 = vmatpush.bf16.msrb.mxu0 %v2200_v36  ;;  %v842_v45 = vsel %vm3490_vm9, %v837_v38, %v841_v17  ;;  %v2412_v14 = vld [vmem:[%s3370_s11 + $0x24] sm:$0xf]  ;;  %v2173_v15 = vld [vmem:[%s3370_s11 + $0x28] sm:$0xf0]  ;;  %v2369_v18 = vor.u32 %v2479_v8, %v2368_v7  ;;  %v2360_v20 = vld [vmem:[%s3370_s11 + $0x220] sm:$0xf]  ;;  %v2329_v23 = vor.u32 %v2469_v11, %v2328_v4 }
 0x132   : > { %1210 = vmatpush.bf16.msrb.mxu1 %v2164_v29  ;;  %1252 = vmatpush.bf16.msrb.mxu2 %v2232_v37  ;;  %v851_v49 = vrot.slane %v850_v41, 4  ;;  %v886_v51 = vunpack.c.h.b16 %v842_v45  ;;  %v885_v54 = vunpack.c.l.b16 %v842_v45  ;;  %v2468_v16 = vld [vmem:[%s3370_s11 + $0x1e4] sm:$0xf]  ;;  %v2330_v17 = vld [vmem:[%s3370_s11 + $0x1e8] sm:$0xf0]  ;;  %v2176_v19 = vor.u32 %v2412_v14, %v2173_v15  ;;  %p2377_p1 = scmp.ne.s32.totalorder %s2999_s20, 11 }
 0x133   : > { %v2477_v21 = vld [vmem:[%s3370_s11 + $0x224] sm:$0xf0]  ;;  %v2410_v22 = vld [vmem:[%s3370_s11 + $0x14] sm:$0xf]  ;;  %v2165_v24 = vld [vmem:[%s3370_s11 + $0x18] sm:$0xf0]  ;;  %v2333_v27 = vor.u32 %v2468_v16, %v2330_v17 }
 0x134   : > { %v856_v57 = vsel %vm3490_vm9, %v851_v49, %v855_v42  ;;  %v2320_v25 = vld [vmem:[%s3370_s11 + $0x1d0] sm:$0xf]  ;;  %v2467_v26 = vld [vmem:[%s3370_s11 + $0x1d4] sm:$0xf0]  ;;  %v2466_v28 = vld [vmem:[%s3370_s11 + $0x1d4] sm:$0xf]  ;;  %v2361_v30 = vor.u32 %v2477_v21, %v2360_v20  ;;  %v2168_v31 = vor.u32 %v2410_v22, %v2165_v24 }
 0x135   : > { %1235 = vmatpush.bf16.msrb.mxu0 %v2192_v50  ;;  %v888_v0 = vunpack.c.h.b16 %v856_v57  ;;  %v887_v1 = vunpack.c.l.b16 %v856_v57  ;;  %v2322_v29 = vld [vmem:[%s3370_s11 + $0x1d8] sm:$0xf0]  ;;  %v2352_v32 = vld [vmem:[%s3370_s11 + $0x210] sm:$0xf]  ;;  %v2475_v33 = vld [vmem:[%s3370_s11 + $0x214] sm:$0xf0]  ;;  %v2321_v36 = vor.u32 %v2467_v26, %v2320_v25 }
 0x136   : > { %1211 = vmatpush.bf16.msrb.mxu1 %v2156_v43  ;;  %1253 = vmatpush.bf16.msrb.mxu2 %v2224_v55  ;;  %v2408_v34 = vld [vmem:[%s3370_s11 + $0x4] sm:$0xf]  ;;  %v2157_v35 = vld [vmem:[%s3370_s11 + $0x8] sm:$0xf0]  ;;  %v2312_v37 = vld [vmem:[%s3370_s11 + $0x1c0] sm:$0xf]  ;;  %v2325_v39 = vor.u32 %v2466_v28, %v2322_v29  ;;  %v2353_v43 = vor.u32 %v2475_v33, %v2352_v32 }
 0x137   : > { %v890_v10 = vpack.c.b16 %v888_v0, %v886_v51  ;;  %v889_v12 = vpack.c.b16 %v887_v1, %v885_v54  ;;  %v2465_v38 = vld [vmem:[%s3370_s11 + $0x1c4] sm:$0xf0]  ;;  %v2478_v40 = vld [vmem:[%s3370_s11 + $0x234] sm:$0xf]  ;;  %v2464_v41 = vld [vmem:[%s3370_s11 + $0x1c4] sm:$0xf]  ;;  %v2160_v44 = vor.u32 %v2408_v34, %v2157_v35 }
 0x138   : > { %v2314_v42 = vld [vmem:[%s3370_s11 + $0x1c8] sm:$0xf0]  ;;  %v2370_v45 = vld [vmem:[%s3370_s11 + $0x238] sm:$0xf0]  ;;  %v2344_v47 = vld [vmem:[%s3370_s11 + $0x200] sm:$0xf]  ;;  %v2313_v49 = vor.u32 %v2465_v38, %v2312_v37 }
 0x139   : > { %1236 = vmatpush.bf16.msrb.mxu0 %v2184_v2  ;;  %2144 = vmatmul.msk.bf16.vlgmr.msra.gmra.mxu3 %vm1012_vm10, %v890_v10  ;;  %v2405_v46 = vld [vmem:[#allocation3 + $0x4] sm:$0xf]  ;;  %v2473_v48 = vld [vmem:[%s3370_s11 + $0x204] sm:$0xf0]  ;;  %v2149_v50 = vld [vmem:[#allocation3 + $0x10] sm:$0xf0]  ;;  %v2373_v53 = vor.u32 %v2478_v40, %v2370_v45  ;;  %v2317_v56 = vor.u32 %v2464_v41, %v2314_v42 }
 0x13a   : > { %2143 = vmatmul.msk.bf16.vlgmr.msra.gmra.mxu1 %vm1012_vm10, %v890_v10  ;;  %1435 = vmatpush.bf16.msra.mxu3 %v2337_v3  ;;  %v2147_v51 = vld [vmem:[#allocation3] sm:$0xf]  ;;  %v2406_v52 = vld [vmem:[#allocation3 + $0xc] sm:$0xf0]  ;;  %v2304_v54 = vld [vmem:[%s3370_s11 + $0x1b0] sm:$0xf]  ;;  %v2345_v59 = vor.u32 %v2473_v48, %v2344_v47  ;;  %v2152_v63 = vor.u32 %v2405_v46, %v2149_v50 }
 0x13b   : > { %1052 = vmatmul.bf16.vlgmr.msra.gmra.mxu2 %v889_v12  ;;  %1024 = vmatmul.bf16.vlgmr.msra.gmra.mxu0 %v889_v12  ;;  %v2463_v55 = vld [vmem:[%s3370_s11 + $0x1b4] sm:$0xf0]  ;;  %v2462_v57 = vld [vmem:[%s3370_s11 + $0x1b4] sm:$0xf]  ;;  %v2306_v58 = vld [vmem:[%s3370_s11 + $0x1b8] sm:$0xf0]  ;;  %v2148_v0 = vor.u32 %v2406_v52, %v2147_v51 }
 0x13c   : > { %1463 = vmatpush.bf16.msra.mxu2 %v2341_v13  ;;  %1453 = vmatpush.bf16.msra.mxu1 %v2369_v18  ;;  %v2476_v1 = vld [vmem:[%s3370_s11 + $0x224] sm:$0xf]  ;;  %v2362_v2 = vld [vmem:[%s3370_s11 + $0x228] sm:$0xf0]  ;;  %v2305_v3 = vor.u32 %v2463_v55, %v2304_v54  ;;  %v2296_v4 = vld [vmem:[%s3370_s11 + $0x1a0] sm:$0xf]  ;;  %v2309_v11 = vor.u32 %v2462_v57, %v2306_v58 }
 0x13d   : > { %1237 = vmatpush.bf16.msrb.mxu0 %v2176_v19  ;;  %v2461_v7 = vld [vmem:[%s3370_s11 + $0x1a4] sm:$0xf0]  ;;  %v1261_v10 = vld [vmem:[#allocation3 + $0x10] sm:$0xee]  ;;  %v2460_v12 = vld [vmem:[%s3370_s11 + $0x1a4] sm:$0xf]  ;;  %v2365_v14 = vor.u32 %v2476_v1, %v2362_v2 }
 0x13e   : > { %1436 = vmatpush.bf16.msra.mxu3 %v2329_v23  ;;  %v1260_v8 = vld [vmem:[#allocation3] sm:$0xee]  ;;  %v1271_v15 = vrot.slane %v3469_v62, 5  ;;  %v2474_v16 = vld [vmem:[%s3370_s11 + $0x214] sm:$0xf]  ;;  %v1275_v18 = vrot.slane %v3476_v9, 5  ;;  %v2297_v19 = vor.u32 %v2461_v7, %v2296_v4 }
 0x13f   : > { %v2298_v13 = vld [vmem:[%s3370_s11 + $0x1a8] sm:$0xf0]  ;;  %v2354_v17 = vld [vmem:[%s3370_s11 + $0x218] sm:$0xf0]  ;;  %v2251_v20 = vrot.slane %v1260_v8, 9  ;;  %v2252_v21 = vrot.slane %v1261_v10, 9 }
 0x140   : > { %1464 = vmatpush.bf16.msra.mxu2 %v2333_v27  ;;  %1454 = vmatpush.bf16.msra.mxu1 %v2361_v30  ;;  %v2288_v22 = vld [vmem:[%s3370_s11 + $0x190] sm:$0xf]  ;;  %v2459_v62 = vld [vmem:[%s3370_s11 + $0x194] sm:$0xf0]  ;;  %v2301_v23 = vor.u32 %v2460_v12, %v2298_v13  ;;  %v2458_v9 = vld [vmem:[%s3370_s11 + $0x194] sm:$0xf]  ;;  %v2357_v25 = vor.u32 %v2474_v16, %v2354_v17 }
 0x141   : > { %1238 = vmatpush.bf16.msrb.mxu0 %v2168_v31  ;;  %v2290_v24 = vld [vmem:[%s3370_s11 + $0x198] sm:$0xf0]  ;;  %v2472_v26 = vld [vmem:[%s3370_s11 + $0x204] sm:$0xf]  ;;  %v2346_v27 = vld [vmem:[%s3370_s11 + $0x208] sm:$0xf0]  ;;  %v2289_v28 = vor.u32 %v2459_v62, %v2288_v22  ;;  %v1272_v29 = vsel %vm1268_vm13, %v2251_v20, %v1271_v15  ;;  %v1276_v30 = vsel %vm1268_vm13, %v2252_v21, %v1275_v18 }
 0x142   : > { %1437 = vmatpush.bf16.msra.mxu3 %v2321_v36  ;;  %v2280_v31 = vld [vmem:[%s3370_s11 + $0x180] sm:$0xf]  ;;  %v2457_v32 = vld [vmem:[%s3370_s11 + $0x184] sm:$0xf0]  ;;  %v2293_v33 = vor.u32 %v2458_v9, %v2290_v24  ;;  %v2456_v34 = vld [vmem:[%s3370_s11 + $0x184] sm:$0xf]  ;;  %v2349_v36 = vor.u32 %v2472_v26, %v2346_v27  ;;  %v1305_v37 = vunpack.c.l.b16 %v1272_v29  ;;  %v1306_v38 = vunpack.c.h.b16 %v1272_v29 }
 0x143   : > { %v2282_v35 = vld [vmem:[%s3370_s11 + $0x188] sm:$0xf0]  ;;  %v1308_v40 = vunpack.c.h.b16 %v1276_v30  ;;  %v2281_v41 = vor.u32 %v2457_v32, %v2280_v31  ;;  %v1497_v10 = vld [vmem:[%s1496_s6] sm:$0x3] }
 0x144   : > { %1465 = vmatpush.bf16.msra.mxu2 %v2325_v39  ;;  %1455 = vmatpush.bf16.msra.mxu1 %v2353_v43  ;;  %v1307_v39 = vunpack.c.l.b16 %v1276_v30  ;;  %v2285_v42 = vor.u32 %v2456_v34, %v2282_v35  ;;  %v1500_v16 = vperm.slane %v1497_v10, 1 }
 0x145   : > { %1239 = vmatpush.bf16.msrb.mxu0 %v2160_v44  ;;  %v1310_v44 = vpack.c.b16 %v1308_v40, %v1306_v38  ;;  %v3023_v40 = vmov 192.0  }
 0x146   : > { %1438 = vmatpush.bf16.msra.mxu3 %v2313_v49  ;;  %v1309_v43 = vpack.c.b16 %v1307_v39, %v1305_v37  ;;  %2633 = vrcp.f32 %v3023_v40 }
 0x148   : > { %1466 = vmatpush.bf16.msra.mxu2 %v2317_v56  ;;  %1456 = vmatpush.bf16.msra.mxu1 %v2345_v59 }
 0x149   : > { %1481 = vmatpush.bf16.msra.mxu0 %v2373_v53  ;;  %2249 = vmatmul.msk.bf16.vlgmr.msrb.gmra.mxu3 %vm1012_vm10, %v2152_v63 }
 0x14a   : > { %1212 = vmatmul.bf16.vlgmr.msrb.gmra.mxu1 %v2148_v0  ;;  %1439 = vmatpush.bf16.msra.mxu3 %v2305_v3 }
 0x14b   : > { %2250 = vmatmul.msk.bf16.vlgmr.msrb.gmra.mxu2 %vm1012_vm10, %v2152_v63  ;;  %1240 = vmatmul.bf16.vlgmr.msrb.gmra.mxu0 %v2148_v0 }
 0x14c   : > { %1467 = vmatpush.bf16.msra.mxu2 %v2309_v11 }
 0x14d   : > { %1482 = vmatpush.bf16.msra.mxu0 %v2365_v14 }
 0x14e   : > { %1440 = vmatpush.bf16.msra.mxu3 %v2297_v19  ;;  %v1499_v19 = vperm.slane %v1497_v10, 0  ;;  %v747_v10 = vld [vmem:[#allocation1 + $0x3] ss:$4 sm:$0xff] }
 0x14f   : > { %757 = vst.msk [vmem:[%s3258_s27] sm:$0xf] %vm3578_vm1, %v747_v10 }
 0x150   : > { %1468 = vmatpush.bf16.msra.mxu2 %v2301_v23 }
 0x151   : > { %1483 = vmatpush.bf16.msra.mxu0 %v2357_v25 }
 0x152   : > { %1441 = vmatpush.bf16.msra.mxu3 %v2289_v28 }
 0x154   : > { %1469 = vmatpush.bf16.msra.mxu2 %v2293_v33 }
 0x155   : > { %1484 = vmatpush.bf16.msra.mxu0 %v2349_v36 }
 0x156   : > { %1442 = vmatpush.bf16.msra.mxu3 %v2281_v41  ;;  %v2634_v41 = vpop.eup %2633 }
 0x157   : > { %vm1520_vm14 = vweird.f32 %v2634_v41 }
 0x158   : > { %1470 = vmatpush.bf16.msra.mxu2 %v2285_v42  ;;  %v1516_v42 = vmul.f32 192.0, %v2634_v41 }
 0x159   : > { %1443 = vmatmul.bf16.vlgmr.msra.gmra.mxu3 %v1309_v43 }
 0x15a   : > { %2374 = vmatmul.msk.bf16.vlgmr.msra.gmra.mxu1 %vm1012_vm10, %v1310_v44 }
 0x15b   : > { %1471 = vmatmul.bf16.vlgmr.msra.gmra.mxu2 %v1309_v43  ;;  %2375 = vmatmul.msk.bf16.vlgmr.msra.gmra.mxu0 %vm1012_vm10, %v1310_v44  ;;  %v1517_v43 = vsub.f32 1.0, %v1516_v42 }
 0x15d   : > { %v1518_v44 = vmul.f32 %v2634_v41, %v1517_v43 }
 0x1b7   : > { %v1039_v45 = vpop.f32.mrf.mxu1 }
 0x1b8   : > { %v1025_v46 = vpop.f32.mrf.mxu0 }
 0x1b9   : > { %v1040_v63 = vadd.f32 %v1039_v45, %v1025_v46  ;;  %v1519_v45 = vadd.f32 %v2634_v41, %v1518_v44 }
 0x1bb   : > { %v1521_v46 = vsel %vm1520_vm14, %v2634_v41, %v1519_v45 }
 0x1bc   : > { %v1067_v47 = vpop.f32.mrf.mxu3 }
 0x1be   : > { %v1053_v48 = vpop.f32.mrf.mxu2 }
 0x1bf   : > { %v1041_v49 = vpop.f32.mrf.mxu1  ;;  %v1068_v1 = vadd.f32 %v1067_v47, %v1053_v48 }
 0x1c0   : > { %v1027_v50 = vpop.f32.mrf.mxu0 }
 0x1c1   : > { %v1042_v17 = vadd.f32 %v1041_v49, %v1027_v50 }
 0x1c4   : > { %v1069_v51 = vpop.f32.mrf.mxu3 }
 0x1c6   : > { %v1055_v52 = vpop.f32.mrf.mxu2 }
 0x1c7   : > { %v1213_v53 = vpop.f32.mrf.mxu1  ;;  %v1070_v20 = vadd.f32 %v1069_v51, %v1055_v52 }
 0x1c8   : > { %v1241_v54 = vpop.f32.mrf.mxu0  ;;  %v1214_v3 = vadd.f32 %v1213_v53, %v1040_v63 }
 0x1c9   : > { %v1242_v4 = vadd.f32 %v1241_v54, %v1068_v1 }
 0x1cc   : > { %v1227_v55 = vpop.f32.mrf.mxu3 }
 0x1cd   : > { %v1228_v11 = vadd.f32 %v1227_v55, %v1214_v3 }
 0x1ce   : > { %v1255_v56 = vpop.f32.mrf.mxu2 }
 0x1cf   : > { %v1215_v57 = vpop.f32.mrf.mxu1  ;;  %v1256_v14 = vadd.f32 %v1255_v56, %v1242_v4  ;;  %v751_v4 = vld [vmem:[#allocation1 + $0x23] ss:$4 sm:$0xff] }
 0x1d0   : > { %v1243_v58 = vpop.f32.mrf.mxu0  ;;  %v1216_v22 = vadd.f32 %v1215_v57, %v1042_v17  ;;  %758 = vst.msk [vmem:[%s3258_s27 + $0x4] sm:$0xf] %vm3578_vm1, %v751_v4 }
 0x1d1   : > { %v1244_v62 = vadd.f32 %v1243_v58, %v1070_v20 }
 0x1d4   : > { %v1229_v59 = vpop.f32.mrf.mxu3 }
 0x1d5   : > { %v1230_v27 = vadd.f32 %v1229_v59, %v1216_v22 }
 0x1d6   : > { %v1257_v0 = vpop.f32.mrf.mxu2 }
 0x1d7   : > { %v1458_v2 = vpop.f32.mrf.mxu1  ;;  %v1258_v32 = vadd.f32 %v1257_v0, %v1244_v62 }
 0x1d8   : > { %v1486_v7 = vpop.f32.mrf.mxu0 }
 0x1dc   : > { %v1444_v8 = vpop.f32.mrf.mxu3 }
 0x1dd   : > { %v1459_v12 = vadd.f32 %v1458_v2, %v1444_v8 }
 0x1de   : > { %v1472_v13 = vpop.f32.mrf.mxu2 }
 0x1df   : > { %v1487_v15 = vadd.f32 %v1486_v7, %v1472_v13  ;;  %v1491_v18 = vadd.f32 %v1459_v12, %v1228_v11  ;;  %v1460_v23 = vpop.f32.mrf.mxu1 }
 0x1e0   : > { %v1488_v29 = vpop.f32.mrf.mxu0 }
 0x1e1   : > { %v1492_v21 = vadd.f32 %v1487_v15, %v1256_v14  ;;  %v1503_v24 = vadd.f32 %v1499_v19, %v1491_v18  ;;  %v1569_v18 = vld [vmem:[%s1568_s0] sm:$0x3] }
 0x1e3   : > { %v1504_v9 = vadd.f32 %v1500_v16, %v1492_v21  ;;  %v1580_v21 = vld [vmem:[%s1579_s7] sm:$0x3] }
 0x1e4   : > { %v1446_v25 = vpop.f32.mrf.mxu3 }
 0x1e5   : > { %v1507_v26 = vsel %vm1012_vm10, %v1504_v9, 0.0  ;;  %v1461_v28 = vadd.f32 %v1460_v23, %v1446_v25  ;;  %v1571_v23 = vperm.slane %v1569_v18, 0 }
 0x1e6   : > { %v1474_v30 = vpop.f32.mrf.mxu2  ;;  %v1508_v31 = vadd.f32 %v1507_v26, %v1503_v24  ;;  %v1582_v26 = vperm.slane %v1580_v21, 0 }
 0x1e7   : > { %v1489_v33 = vadd.f32 %v1488_v29, %v1474_v30  ;;  %v1493_v34 = vadd.f32 %v1461_v28, %v1230_v27  ;;  %v1583_v27 = vperm.slane %v1580_v21, 1 }
 0x1e8   : > { %1509 = vadd.xlane.f32.xlu0 %v1508_v31 }
 0x1e9   : > { %v1494_v35 = vadd.f32 %v1489_v33, %v1258_v32  ;;  %v1505_v37 = vadd.f32 %v1499_v19, %v1493_v34 }
 0x1eb   : > { %v1506_v36 = vadd.f32 %v1500_v16, %v1494_v35 }
 0x1ed   : > { %v1511_v38 = vsel %vm1012_vm10, %v1506_v36, 0.0 }
 0x1ee   : > { %v1512_v39 = vadd.f32 %v1511_v38, %v1505_v37 }
 0x1f0   : > { %1513 = vadd.xlane.f32.xlu0 %v1512_v39 }
 0x25b   : > { %v1510_v47 = vpop.xlane.xlu0 %1509 }
 0x25c   : > { %v1522_v48 = vmul.f32 %v1521_v46, %v1510_v47 }
 0x25e   : > { %v1524_v49 = vsub.f32 %v1503_v24, %v1522_v48  ;;  %v1525_v50 = vsub.f32 %v1504_v9, %v1522_v48  ;;  %v1572_v9 = vperm.slane %v1569_v18, 1 }
 0x260   : > { %v1528_v51 = vmul.f32 %v1524_v49, %v1524_v49  ;;  %v1529_v52 = vmul.f32 %v1525_v50, %v1525_v50 }
 0x262   : > { %v1532_v53 = vsel %vm1012_vm10, %v1529_v52, 0.0 }
 0x263   : > { %v1514_v54 = vpop.xlane.xlu0 %1513  ;;  %v1533_v55 = vadd.f32 %v1532_v53, %v1528_v51 }
 0x264   : > { %v1523_v56 = vmul.f32 %v1521_v46, %v1514_v54 }
 0x265   : > { %1534 = vadd.xlane.f32.xlu1 %v1533_v55 }
 0x266   : > { %v1526_v57 = vsub.f32 %v1505_v37, %v1523_v56  ;;  %v1527_v58 = vsub.f32 %v1506_v36, %v1523_v56 }
 0x268   : > { %v1530_v59 = vmul.f32 %v1526_v57, %v1526_v57  ;;  %v1531_v63 = vmul.f32 %v1527_v58, %v1527_v58 }
 0x26a   : > { %v1536_v0 = vsel %vm1012_vm10, %v1531_v63, 0.0 }
 0x26b   : > { %v1537_v1 = vadd.f32 %v1536_v0, %v1530_v59 }
 0x26d   : > { %1538 = vadd.xlane.f32.xlu1 %v1537_v1 }
 0x2d8   : > { %v1535_v2 = vpop.xlane.xlu1 %1534 }
 0x2d9   : > { %v1540_v3 = vmul.f32 %v1535_v2, %v1521_v46 }
 0x2db   : > { %v1542_v7 = vadd.f32 1e-05, %v1540_v3 }
 0x2dd   : > { %2635 = vrsqrt.f32 %v1542_v7  ;;  %vm1550_vm3 = vweird.f32 %v1542_v7 }
 0x2e0   : > { %v1539_v11 = vpop.xlane.xlu1 %1538 }
 0x2e1   : > { %v1541_v12 = vmul.f32 %v1539_v11, %v1521_v46 }
 0x2e3   : > { %v2636_v13 = vpop.eup %2635  ;;  %v1543_v14 = vadd.f32 1e-05, %v1541_v12 }
 0x2e4   : > { %v1545_v15 = vmul.f32 %v2636_v13, %v1542_v7  ;;  %vm1551_vm2 = vweird.f32 %v2636_v13 }
 0x2e5   : > { %2637 = vrsqrt.f32 %v1543_v14  ;;  %vm1552_vm4 = vmor %vm1550_vm3, %vm1551_vm2  ;;  %vm1560_vm6 = vweird.f32 %v1543_v14 }
 0x2e6   : > { %v1546_v16 = vmul.f32 %v2636_v13, %v1545_v15 }
 0x2e8   : > { %v1547_v17 = vmul.f32 0.5, %v1546_v16 }
 0x2ea   : > { %v1548_v19 = vsub.f32 1.5, %v1547_v17 }
 0x2eb   : > { %v2638_v20 = vpop.eup %2637 }
 0x2ec   : > { %v1549_v22 = vmul.f32 %v2636_v13, %v1548_v19  ;;  %v1555_v62 = vmul.f32 %v2638_v20, %v1543_v14  ;;  %vm1561_vm5 = vweird.f32 %v2638_v20 }
 0x2ed   : > { %vm1562_vm7 = vmor %vm1560_vm6, %vm1561_vm5 }
 0x2ee   : > { %v1553_v24 = vsel %vm1552_vm4, %v2636_v13, %v1549_v22  ;;  %v1556_v25 = vmul.f32 %v2638_v20, %v1555_v62 }
 0x2ef   : > { %v1564_v28 = vmul.f32 %v1553_v24, %v1524_v49  ;;  %v1565_v29 = vmul.f32 %v1553_v24, %v1525_v50  ;;  %v3024_v50 = vmov 0  }
 0x2f0   : > { %v1557_v30 = vmul.f32 0.5, %v1556_v25 }
 0x2f1   : > { %v1575_v31 = vmul.f32 %v1571_v23, %v1564_v28  ;;  %v1576_v32 = vmul.f32 %v1572_v9, %v1565_v29 }
 0x2f2   : > { %v1558_v33 = vsub.f32 1.5, %v1557_v30 }
 0x2f3   : > { %v1586_v34 = vadd.f32 %v1582_v26, %v1575_v31  ;;  %v1587_v35 = vadd.f32 %v1583_v27, %v1576_v32 }
 0x2f4   : > { %v1559_v36 = vmul.f32 %v2638_v20, %v1558_v33 }
 0x2f5   : > { %v1590_v37 = vmax.f32 %v1586_v34, 0.0  ;;  %v1591_v38 = vmax.f32 %v1587_v35, 0.0  ;;  %vm1594_vm8 = vcmp.le.f32.partialorder %v1586_v34, 0.0  ;;  %vm1595_vm12 = vcmp.le.f32.partialorder %v1587_v35, 0.0 }
 0x2f6   : > { %v1563_v39 = vsel %vm1562_vm7, %v2638_v20, %v1559_v36 }
 0x2f7   : > { %v1620_v40 = vadd.f32 %v1590_v37, %v3364_v5  ;;  %v1621_v41 = vadd.f32 %v1591_v38, %v3366_v6  ;;  %v1566_v42 = vmul.f32 %v1563_v39, %v1526_v57  ;;  %v1567_v43 = vmul.f32 %v1563_v39, %v1527_v58 }
 0x2f9   : > { %1624 = vst [vmem:[#allocation2] sm:$0xff] %v1620_v40  ;;  %v1577_v44 = vmul.f32 %v1571_v23, %v1566_v42  ;;  %v1578_v45 = vmul.f32 %v1572_v9, %v1567_v43 }
 0x2fa   : > { %1625 = vst.msk [vmem:[#allocation2 + $0x8] sm:$0xff] %vm1012_vm10, %v1621_v41 }
 0x2fb   : > { %v1588_v46 = vadd.f32 %v1582_v26, %v1577_v44  ;;  %v1589_v47 = vadd.f32 %v1583_v27, %v1578_v45 }
 0x2fd   : > { %v1592_v48 = vmax.f32 %v1588_v46, 0.0  ;;  %v1593_v49 = vmax.f32 %v1589_v47, 0.0  ;;  %vm1596_vm9 = vcmp.le.f32.partialorder %v1588_v46, 0.0  ;;  %vm1597_vm11 = vcmp.le.f32.partialorder %v1589_v47, 0.0 }
 0x2fe   : > { %vm1598_vm13 = vmpackc.low %vm1596_vm9, %vm1594_vm8 }
 0x2ff   : > { %v1599_v5 = vsel %vm1598_vm13, 16711935, %v3024_v50  ;;  %vm1603_vm14 = vmpackc.low %vm1597_vm11, %vm1595_vm12  ;;  %v1622_v6 = vadd.f32 %v1592_v48, %v3410_v60  ;;  %v1623_v51 = vadd.f32 %v1593_v49, %v3412_v61 }
 0x300   : > { %v1601_v52 = vpack.c.b8 %v1599_v5, %v1599_v5  ;;  %v1604_v53 = vsel %vm1603_vm14, 16711935, %v3024_v50 }
 0x301   : > { %v1606_v54 = vpack.c.b8 %v1604_v53, %v1604_v53  ;;  %1626 = vst [vmem:[#allocation2 + $0x10] sm:$0xff] %v1622_v6 }
 0x302   : > { %vm1602_vm15 = vnez %v1601_v52  ;;  %1627 = vst.msk [vmem:[#allocation2 + $0x18] sm:$0xff] %vm1012_vm10, %v1623_v51 }
 0x303   : > { %vm1607_vm0 = vnez %v1606_v54  ;;  %v1608_v55 = vsel %vm1602_vm15, 16843009, %v3024_v50 }
 0x304   : > { %v1609_v56 = vsel %vm1607_vm0, 16843009, %v3024_v50  ;;  %v1610_v57 = vunpack.c.0.s8 %v1608_v55  ;;  %v1612_v58 = vunpack.c.1.s8 %v1608_v55 }
 0x305   : > { %v1611_v59 = vunpack.c.0.s8 %v1609_v56  ;;  %v1613_v63 = vunpack.c.1.s8 %v1609_v56 }
 0x307   : > { %v1614_v0 = vpack.c.b16 %v1611_v59, %v1610_v57  ;;  %v1616_v60 = vpack.c.b16 %v1613_v63, %v1612_v58 }
 0x308   : > { %1631 = sbr.rel (%p2377_p1) target bundleno = 785 (0x311), region = 92 }
 0x309   : > { %v1615_v1 = vpack.c.b8 %v1614_v0, %v1614_v0  ;;  %v1617_v61 = vpack.c.b8 %v1616_v60, %v1616_v60 }
 0x30b   : > { %1618 = vst.msk [vmem:[%s3256_s8] sm:$0xf] %vm3578_vm1, %v1615_v1 }
 0x30c   : > { %1619 = vst.msk [vmem:[%s3256_s8 + $0x4] sm:$0xf] %vm3578_vm1, %v1617_v61 }
 0x30d   : > { %v1632_v2 = vpack.c.bf16 %v1621_v41, %v1620_v40  ;;  %vm1634_vm10 = vcmask 1043456   ;;  %vm1635_vm2 = vcmask 523268   ;;  %v1633_v3 = vpack.c.bf16 %v1623_v51, %v1622_v6 }
 0x30e   : > { %vm1636_vm3 = vmor %vm1635_vm2, %vm1634_vm10 }
 0x30f   : > { %1637 = vst.msk [vmem:[#allocation16] sm:$0xff] %vm1636_vm3, %v1632_v2 }
 0x310   : > { %1638 = vst.msk [vmem:[#allocation16 + $0x8] sm:$0xff] %vm1636_vm3, %v1633_v3 }
 0x311 PF: > { %s2480_s4 = sshll.u32 %s2999_s20, 2  ;;  %s3727_s10 = sld [smem:[#allocation37_spill]] }
 0x312   : > { %s1678_s15 = sshll.u32 %s3256_s8, 4  ;;  %s3610_s16 = scalar_lea.sflag [#allocation18], %s480_s9  ;;  %s1679_s15 = int_to_ptr.vmem [resolvable:$true] %s1678_s15 }
 0x317   : > { %s1677_s29 = scalar_lea.hbm %s3727_s10, %s2480_s4  ;;  %s2869_s14 = scalar_lea.hbm %s3727_s10, 96 }
 0x318   : > { %s1680_s13 = sshll.u32 %s1677_s29, 4  ;;  %s1681_s13 = int_to_ptr.hbm [resolvable:$true] %s1680_s13 }
 0x319   : > { %s2863_s28 = sshra.s32 %s1681_s13, 4  ;;  %s2864_s28 = int_to_ptr.hbm [resolvable:$true] %s2863_s28 }
 0x31a   : > { %s2865_s24 = scalar_lea.hbm %s2864_s28, 8  ;;  %p2870_p10 = scmp.lt.s32.totalorder %s2864_s28, %s3727_s10 }
 0x31b   : > { %p2866_p7 = scmp.ne.s32.totalorder %s2864_s28, %s2865_s24  ;;  %p2871_p12 = scmp.lt.s32.totalorder %s2869_s14, %s2865_s24 }
 0x31d   : > { %p2867_p8 = pnand %p2866_p7, %p3203_p0  ;;  %p2872_p13 = por %p2871_p12, %p2870_p10 }
 0x31f   : > { %p2868_p9 = pneg %p2867_p8 }
 0x321   : > { %p2873_p2 = pnand %p2872_p13, %p2868_p9 }
 0x323   : > { %2876 = shalt.err (!%p2873_p2)
}
 0x324   : > { %s3025_s9 = smov 64   ;;  %s3026_s8 = smov 768  }
 0x325   : > { %s3027_s7 = smov 4   ;;  %s3728_s29 = sld [smem:[#allocation38_spill]] }
 0x326   : > { %2510 = dma.vmem_to_hbm [thread:$0]  (%p3203_p0), %s1679_s15, 128, %s1681_s13, %s3610_s16, %s3025_s9, %s3026_s8, %s3027_s7  }
 0x327   : > { %s3028_s11 = smov [#allocation16]   ;;  %s3729_s0 = sld [smem:[#allocation36_spill]] }
 0x328   : > { %s1658_s20 = sshll.u32 %s3028_s11, 4  ;;  %s1698_s2 = sshll.u32 %s3258_s27, 4  ;;  %s1659_s20 = int_to_ptr.vmem [resolvable:$true] %s1658_s20  ;;  %s1699_s2 = int_to_ptr.vmem [resolvable:$true] %s1698_s2 }
 0x329   : > { %s3029_s3 = smov 128   ;;  %s3030_s10 = smov 8  }
 0x32b   : > { %s1697_s28 = scalar_lea.hbm %s3728_s29, %s2480_s4  ;;  %s2925_s25 = scalar_lea.hbm %s3728_s29, 96 }
 0x32c   : > { %s1700_s24 = sshll.u32 %s1697_s28, 4  ;;  %s1701_s24 = int_to_ptr.hbm [resolvable:$true] %s1700_s24 }
 0x32d   : > { %s1660_s1 = sshll.u32 %s3729_s0, 4  ;;  %s2919_s15 = sshra.s32 %s1701_s24, 4  ;;  %s1661_s1 = int_to_ptr.hbm [resolvable:$true] %s1660_s1  ;;  %s2920_s15 = int_to_ptr.hbm [resolvable:$true] %s2919_s15 }
 0x32e   : > { %2509 = dma.vmem_to_hbm [thread:$0]  (%p296_p11), %s1659_s20, 256, %s1661_s1, [#allocation6], %s3029_s3, %s3029_s3, %s3030_s10  }
 0x32f   : > { %s2921_s4 = scalar_lea.hbm %s2920_s15, 8  ;;  %p2926_p1 = scmp.lt.s32.totalorder %s2920_s15, %s3728_s29 }
 0x330   : > { %p2922_p5 = scmp.ne.s32.totalorder %s2920_s15, %s2921_s4  ;;  %p2927_p7 = scmp.lt.s32.totalorder %s2925_s25, %s2921_s4 }
 0x332   : > { %p2923_p6 = pnand %p2922_p5, %p3203_p0  ;;  %p2928_p8 = por %p2927_p7, %p2926_p1 }
 0x334   : > { %p2924_p3 = pneg %p2923_p6 }
 0x336   : > { %p2929_p9 = pnand %p2928_p8, %p2924_p3 }
 0x338   : > { %2932 = shalt.err (!%p2929_p9)
}
 0x339   : > { %2511 = dma.vmem_to_hbm [thread:$0]  (%p3203_p0), %s1699_s2, 128, %s1701_s24, %s3610_s16, %s3025_s9, %s3026_s8, %s3027_s7  }
 0x33a   : > { %2978 = dma.done.wait (%p296_p11), [#allocation6], 256  }
 0x33b   : > { %2980 = vsyncadd (%p296_p11), [#allocation6], 4294967040 }
 0x33c PF: > { %p2561_p10 = scmp.ge.s32.totalorder %s3007_s22, 2  ;;  %s3730_s1 = sadd.s32 4294967294, %s3007_s22  }
 0x33d   : > { %s1720_s3 = sand.u32 1, %s3730_s1  }
 0x33e   : > { %p2540_p12 = pnand %p2561_p10, %p3212_p4  ;;  %s1721_s10 = scalar_lea.sflag [#allocation18], %s1720_s3 }
 0x340   : > { %p2541_p13 = pneg %p2540_p12 }
 0x342   : > { %2982 = dma.done.wait (%p2541_p13), %s1721_s10, 256  }
 0x343   : > { %2984 = vsyncadd (%p2541_p13), %s1721_s10, 4294967040  ;;  %s32_s22 = sadd.s32 1, %s3007_s22   ;;  %s3731_s17 = smov %s2991_s18 }
 0x344   : > { %p29_p0 = scmp.ge.s32.totalorder %s32_s22, 14   ;;  %s3732_s18 = smov %s2995_s19 }
 0x345   : > { %s3733_s19 = smov %s3210_s12  ;;  %s3734_s20 = smov %s3003_s21 }
 0x346   : > { %s3735_s21 = smov %s3737_s23  ;;  %31 = sbr.rel (!%p29_p0) target bundleno = 23 (0x17), region = 172 }
 0x34b   :  { %1737 = vsyncpa [#allocation5], 1 }
 0x34c   :  { %1739 = vsyncpa [#allocation5 + $0x1], 1 }
 0x34d   :  { %1740 = vsyncpa [#allocation8], 1 }
 0x34e   :  { %1742 = vsyncpa [#allocation8 + $0x1], 1 }
 0x34f   :  { %1743 = vsyncpa [#allocation11], 1 }
 0x350   :  { %1744 = vsyncpa [#allocation14], 1 }
 0x351   :  { %1745 = vsyncpa [#allocation6], 1 }
 0x352   :  { %1747 = vsyncpa [#allocation6 + $0x1], 1 }
 0x353   :  { %1748 = vsyncpa [#allocation18], 1 }
 0x354   :  { %1750 = vsyncpa [#allocation18 + $0x1], 1 }

</bundles_post_ra>
